<compile_context>
chip_gen: v5e
topology: v5e:2x2
jax: 0.10.0
libtpu: 0.0.40
codegen_flags: <defaults>
</compile_context>

<pallas_src>
import jax
import jax.numpy as jnp
from jax import lax
from jax.experimental import pallas as pl
from jax.experimental.pallas import tpu as pltpu

TILE = 128   # row / column tile of the (N, N) distance matrix


def _triplet_tile_kernel(margin_ref, nvalid_ref,           # SMEM scalars
                         xr_ref, xc_ref, tr_ref, tc_ref,   # VMEM tiles
                         ap_ref, an_ref, hinge_ref,        # outputs (1, TILE)
                         ap_acc, an_acc, sq_r):            # VMEM scratch (TILE, 1)
    j = pl.program_id(1)
    n_col_tiles = pl.num_programs(1)
    tn = xc_ref.shape[0]

    # ---- per-row-tile init (first column tile) --------------------------
    @pl.when(j == 0)
    def _init():
        ap_acc[...] = jnp.full_like(ap_acc, -jnp.inf)
        an_acc[...] = jnp.full_like(an_acc, jnp.inf)
        xr32 = xr_ref[...].astype(jnp.float32)
        sq_r[...] = jnp.sum(xr32 * xr32, axis=1, keepdims=True)   # ||x_i||^2 cached

    # ---- pairwise distances for this (row, col) tile ---------------------
    # MXU Gram tile; bf16 inputs use the native bf16 path, f32 accumulation.
    g = lax.dot_general(xr_ref[...], xc_ref[...],
                        (((1,), (1,)), ((), ())),
                        preferred_element_type=jnp.float32)        # (TM, TN)

    xc32 = xc_ref[...].astype(jnp.float32)
    sq_c = jnp.sum(xc32 * xc32, axis=1, keepdims=True)             # (TN, 1)
    dist2 = sq_r[...] + jnp.transpose(sq_c) - 2.0 * g
    dist = jnp.sqrt(jnp.maximum(dist2, 1e-12))                     # clamp(1e-12).sqrt()

    # ---- label-equality mask + column-validity (padding) mask ------------
    same = tr_ref[...] == jnp.transpose(tc_ref[...])               # (TM, TN)
    col = j * tn + lax.broadcasted_iota(jnp.int32, dist.shape, 1)
    valid = col < nvalid_ref[0]

    # ---- single pass over the dist tile: hard-pos max / hard-neg min -----
    ap_tile = jnp.max(jnp.where(same & valid, dist, -jnp.inf), axis=1, keepdims=True)
    an_tile = jnp.min(jnp.where((~same) & valid, dist, jnp.inf), axis=1, keepdims=True)
    ap_acc[...] = jnp.maximum(ap_acc[...], ap_tile)
    an_acc[...] = jnp.minimum(an_acc[...], an_tile)

    # ---- finalize: hinge (MarginRankingLoss, y=1), lane-dense stores ------
    @pl.when(j == n_col_tiles - 1)
    def _finalize():
        ap = ap_acc[...]
        an = an_acc[...]
        hinge = jnp.maximum(ap - an + margin_ref[0], 0.0)
        ap_ref[...] = jnp.transpose(ap)        # (1, TILE), lane-dense output
        an_ref[...] = jnp.transpose(an)
        hinge_ref[...] = jnp.transpose(hinge)


def _round_up(x, m):
    return ((x + m - 1) // m) * m


@jax.jit
def triplet_forward(inputs, targets, margin):
    """Returns (loss, sum(dist_ap), sum(dist_an)) as device scalars."""
    n, d = inputs.shape
    n_pad = _round_up(max(n, TILE), TILE)

    x = inputs
    # Labels as a float32 column: exact for integer ids < 2**24 and keeps every
    # in-kernel transpose a plain 32-bit (k,1)->(1,k) relayout.
    t = targets.astype(jnp.float32).reshape(n, 1)
    if n_pad != n:
        x = jnp.pad(x, ((0, n_pad - n), (0, 0)))
        t = jnp.pad(t, ((0, n_pad - n), (0, 0)), constant_values=-1.0)

    margin_arr = jnp.asarray(margin, jnp.float32).reshape(1)
    nvalid = jnp.full((1,), n, jnp.int32)

    gm = n_pad // TILE
    smem = pl.BlockSpec(memory_space=pltpu.MemorySpace.SMEM)
    in_specs = [
        smem,                                               # margin (runtime scalar)
        smem,                                               # valid row count
        pl.BlockSpec((TILE, d), lambda i, j: (i, 0)),       # x, row tile (resident over j)
        pl.BlockSpec((TILE, d), lambda i, j: (j, 0)),       # x, column tile
        pl.BlockSpec((TILE, 1), lambda i, j: (i, 0)),       # labels, row tile
        pl.BlockSpec((TILE, 1), lambda i, j: (j, 0)),       # labels, column tile
    ]
    out_row = pl.BlockSpec((1, TILE), lambda i, j: (0, i))
    out_shape = tuple(jax.ShapeDtypeStruct((1, n_pad), jnp.float32) for _ in range(3))

    ap, an, hinge = pl.pallas_call(
        _triplet_tile_kernel,
        out_shape=out_shape,
        grid=(gm, gm),
        in_specs=in_specs,
        out_specs=(out_row, out_row, out_row),
        scratch_shapes=[pltpu.VMEM((TILE, 1), jnp.float32),
                        pltpu.VMEM((TILE, 1), jnp.float32),
                        pltpu.VMEM((TILE, 1), jnp.float32)],
        compiler_params=pltpu.CompilerParams(
            dimension_semantics=("parallel", "arbitrary")),
    )(margin_arr, nvalid, x, x, t, t)

    ap = ap[0, :n]
    an = an[0, :n]
    loss = jnp.sum(hinge[0, :n]) / n
    return loss, jnp.sum(ap), jnp.sum(an)


class DynamicTripletLoss:
    """JAX/Pallas port of the PyTorch DynamicTripletLoss (forward pass)."""

    def __init__(self, margin=0.3, warmup_epochs=10, freq=25):
        self.margin = margin
        self.weight = 1
        self.epoch = 0
        self.freq = freq
        self.warmup_epochs = warmup_epochs
        self.reset_avg()

    def reset_avg(self):
        # Device-side running statistics: no per-step host sync.
        self.avg_an = jnp.zeros((), jnp.float32)
        self.avg_ap = jnp.zeros((), jnp.float32)
        self.num_instances = 0

    def update_margin(self):
        self.epoch += 1
        if self.epoch >= self.warmup_epochs and self.epoch % self.freq == 0:
            # The only device->host sync: once per margin update, not per step.
            self.margin = float(self.avg_an - self.avg_ap) * self.weight
        self.reset_avg()

    def __call__(self, inputs, targets):
        # NOTE: rows whose label has no in-batch negative give dist_an = +inf
        # (loss contribution 0, avg_an poisoned) — same behavior as the usual
        # re-id recipe; ensure the sampler provides >=1 negative per row.
        n = inputs.shape[0]
        loss, sum_ap, sum_an = triplet_forward(
            inputs, targets, jnp.float32(self.margin))
        denom = self.num_instances + n
        self.avg_an = (sum_an + self.num_instances * self.avg_an) / denom
        self.avg_ap = (sum_ap + self.num_instances * self.avg_ap) / denom
        self.num_instances += n
        return loss


def _reference_loss(inputs, targets, margin):
    """Pure-JAX reference for sanity checking."""
    x = inputs.astype(jnp.float32)
    sq = jnp.sum(x * x, axis=1, keepdims=True)
    g = jnp.dot(x, x.T, precision=lax.Precision.HIGHEST)
    dist = jnp.sqrt(jnp.maximum(sq + sq.T - 2.0 * g, 1e-12))
    mask = targets[:, None] == targets[None, :]
    dist_ap = jnp.max(jnp.where(mask, dist, -jnp.inf), axis=1)
    dist_an = jnp.min(jnp.where(mask, jnp.inf, dist), axis=1)
    loss = jnp.mean(jnp.maximum(dist_ap - dist_an + margin, 0.0))
    return loss, jnp.sum(dist_ap), jnp.sum(dist_an)


if __name__ == "__main__":
    key = jax.random.PRNGKey(0)
    k1, k2 = jax.random.split(key)

    # Case 1: 2x2 grid of 128-tiles, bf16 features (64 ids x 4 instances).
    n, d = 256, 64
    feats = jax.random.normal(k1, (n, d), dtype=jnp.float32).astype(jnp.bfloat16)
    labels = jnp.repeat(jnp.arange(n // 4, dtype=jnp.int32), 4)

    criterion = DynamicTripletLoss(margin=0.3)
    loss = jax.block_until_ready(criterion(feats, labels))
    ref_loss, ref_ap, ref_an = _reference_loss(feats, labels, 0.3)
    ref_loss = jax.block_until_ready(ref_loss)
    assert abs(float(loss) - float(ref_loss)) < 1e-2, (float(loss), float(ref_loss))

    ref_avg_ap = float(ref_ap) / n
    ref_avg_an = float(ref_an) / n
    assert abs(float(criterion.avg_ap) - ref_avg_ap) < 1e-2 * max(1.0, abs(ref_avg_ap))
    assert abs(float(criterion.avg_an) - ref_avg_an) < 1e-2 * max(1.0, abs(ref_avg_an))

    # Changing the margin is a runtime (SMEM) value: no recompile, still correct.
    criterion.margin = 0.7
    loss2 = jax.block_until_ready(criterion(feats, labels))
    ref_loss2, _, _ = _reference_loss(feats, labels, 0.7)
    assert abs(float(loss2) - float(ref_loss2)) < 1e-2, (float(loss2), float(ref_loss2))

    # Case 2: N not a multiple of the tile (exercises padding + validity mask).
    n2, d2 = 40, 32
    feats2 = jax.random.normal(k2, (n2, d2), dtype=jnp.float32).astype(jnp.bfloat16)
    labels2 = jnp.repeat(jnp.arange(n2 // 4, dtype=jnp.int32), 4)
    crit2 = DynamicTripletLoss(margin=0.3)
    loss3 = jax.block_until_ready(crit2(feats2, labels2))
    ref_loss3, _, _ = _reference_loss(feats2, labels2, 0.3)
    assert abs(float(loss3) - float(ref_loss3)) < 1e-2, (float(loss3), float(ref_loss3))

    # TODO(synk): backward pass (autograd) of MarginRankingLoss is not implemented;
    # this is the forward-only port, matching the task spec.
    print("KERNEL_OK")
</pallas_src>

<mosaic_0001>
module attributes {stable_mosaic.version = 11 : i64} {
  func.func @_triplet_tile_kernel(%arg0: i32, %arg1: i32, %arg2: memref<1xf32, #tpu.memory_space<smem>>, %arg3: memref<1xi32, #tpu.memory_space<smem>>, %arg4: memref<128x64xbf16, #tpu.memory_space<vmem>>, %arg5: memref<128x64xbf16, #tpu.memory_space<vmem>>, %arg6: memref<128x1xf32, #tpu.memory_space<vmem>>, %arg7: memref<128x1xf32, #tpu.memory_space<vmem>>, %arg8: memref<1x128xf32, #tpu.memory_space<vmem>>, %arg9: memref<1x128xf32, #tpu.memory_space<vmem>>, %arg10: memref<1x128xf32, #tpu.memory_space<vmem>>, %arg11: memref<128x1xf32, #tpu.memory_space<vmem>>, %arg12: memref<128x1xf32, #tpu.memory_space<vmem>>, %arg13: memref<128x1xf32, #tpu.memory_space<vmem>>) attributes {dimension_semantics = [#tpu.dimension_semantics<parallel>, #tpu.dimension_semantics<arbitrary>], iteration_bounds = array<i64: 2, 2>, scalar_prefetch = 0 : i64, scratch_operands = 3 : i64, tpu.core_type = #tpu.core_type<tc>, window_params = [{transform_indices = @transform_0, window_bounds = array<i64: 1>}, {transform_indices = @transform_1, window_bounds = array<i64: 1>}, {transform_indices = @transform_2, window_bounds = array<i64: 128, 64>}, {transform_indices = @transform_3, window_bounds = array<i64: 128, 64>}, {transform_indices = @transform_4, window_bounds = array<i64: 128, 1>}, {transform_indices = @transform_5, window_bounds = array<i64: 128, 1>}, {transform_indices = @transform_6, window_bounds = array<i64: 1, 128>}, {transform_indices = @transform_7, window_bounds = array<i64: 1, 128>}, {transform_indices = @transform_8, window_bounds = array<i64: 1, 128>}]} {
    %c0_i32 = arith.constant 0 : i32
    %0 = arith.cmpi eq, %arg1, %c0_i32 : i32
    %1 = arith.extui %0 : i1 to i32
    %c0_i32_0 = arith.constant 0 : i32
    %2 = arith.cmpi ne, %1, %c0_i32_0 : i32
    scf.if %2 {
      %cst_30 = arith.constant 0xFF800000 : f32
      %55 = vector.broadcast %cst_30 : f32 to vector<128x1xf32>
      %c0_31 = arith.constant 0 : index
      %c0_32 = arith.constant 0 : index
      %56 = vector.load %arg11[%c0_31, %c0_32] : memref<128x1xf32, #tpu.memory_space<vmem>>, vector<128x1xf32>
      tpu.vector_store %arg11[%c0_31, %c0_32], %55 {strides = array<i32>} : memref<128x1xf32, #tpu.memory_space<vmem>>, vector<128x1xf32>,
      %cst_33 = arith.constant 0x7F800000 : f32
      %57 = vector.broadcast %cst_33 : f32 to vector<128x1xf32>
      %c0_34 = arith.constant 0 : index
      %c0_35 = arith.constant 0 : index
      %58 = vector.load %arg12[%c0_34, %c0_35] : memref<128x1xf32, #tpu.memory_space<vmem>>, vector<128x1xf32>
      tpu.vector_store %arg12[%c0_34, %c0_35], %57 {strides = array<i32>} : memref<128x1xf32, #tpu.memory_space<vmem>>, vector<128x1xf32>,
      %c0_36 = arith.constant 0 : index
      %c0_37 = arith.constant 0 : index
      %59 = vector.load %arg4[%c0_36, %c0_37] : memref<128x64xbf16, #tpu.memory_space<vmem>>, vector<128x64xbf16>
      %60 = arith.extf %59 : vector<128x64xbf16> to vector<128x64xf32>
      %61 = arith.mulf %60, %60 : vector<128x64xf32>
      %cst_38 = arith.constant dense<0.000000e+00> : vector<128xf32>
      %62 = vector.multi_reduction <add>, %61, %cst_38 [1] : vector<128x64xf32> to vector<128xf32>
      %63 = vector.shape_cast %62 : vector<128xf32> to vector<128x1xf32>
      %c0_39 = arith.constant 0 : index
      %c0_40 = arith.constant 0 : index
      %64 = vector.load %arg13[%c0_39, %c0_40] : memref<128x1xf32, #tpu.memory_space<vmem>>, vector<128x1xf32>
      tpu.vector_store %arg13[%c0_39, %c0_40], %63 {strides = array<i32>} : memref<128x1xf32, #tpu.memory_space<vmem>>, vector<128x1xf32>,
    } else {
    }
    %c0 = arith.constant 0 : index
    %c0_1 = arith.constant 0 : index
    %3 = vector.load %arg4[%c0, %c0_1] : memref<128x64xbf16, #tpu.memory_space<vmem>>, vector<128x64xbf16>
    %c0_2 = arith.constant 0 : index
    %c0_3 = arith.constant 0 : index
    %4 = vector.load %arg5[%c0_2, %c0_3] : memref<128x64xbf16, #tpu.memory_space<vmem>>, vector<128x64xbf16>
    %cst = arith.constant dense<0.000000e+00> : vector<128x128xf32>
    %5 = tpu.matmul %3, %4, %cst {dimension_numbers = #tpu.dot_dimension_numbers<[1], [1], [0], [0], [0, 0, 1, 0], [], []>} : vector<128x64xbf16>, vector<128x64xbf16>, vector<128x128xf32> -> vector<128x128xf32>
    %c0_4 = arith.constant 0 : index
    %c0_5 = arith.constant 0 : index
    %6 = vector.load %arg5[%c0_4, %c0_5] : memref<128x64xbf16, #tpu.memory_space<vmem>>, vector<128x64xbf16>
    %7 = arith.extf %6 : vector<128x64xbf16> to vector<128x64xf32>
    %8 = arith.mulf %7, %7 : vector<128x64xf32>
    %cst_6 = arith.constant dense<0.000000e+00> : vector<128xf32>
    %9 = vector.multi_reduction <add>, %8, %cst_6 [1] : vector<128x64xf32> to vector<128xf32>
    %10 = vector.shape_cast %9 : vector<128xf32> to vector<128x1xf32>
    %c0_7 = arith.constant 0 : index
    %c0_8 = arith.constant 0 : index
    %11 = vector.load %arg13[%c0_7, %c0_8] : memref<128x1xf32, #tpu.memory_space<vmem>>, vector<128x1xf32>
    %12 = tpu.transpose %10, [1, 0] : vector<128x1xf32> -> vector<1x128xf32>
    %13 = vector.broadcast %11 : vector<128x1xf32> to vector<128x128xf32>
    %14 = vector.broadcast %12 : vector<1x128xf32> to vector<128x128xf32>
    %15 = arith.addf %13, %14 : vector<128x128xf32>
    %cst_9 = arith.constant 2.000000e+00 : f32
    %16 = vector.broadcast %cst_9 : f32 to vector<128x128xf32>
    %17 = arith.mulf %16, %5 : vector<128x128xf32>
    %18 = arith.subf %15, %17 : vector<128x128xf32>
    %cst_10 = arith.constant 9.99999996E-13 : f32
    %19 = vector.broadcast %cst_10 : f32 to vector<128x128xf32>
    %20 = arith.maximumf %18, %19 : vector<128x128xf32>
    %21 = math.sqrt %20 : vector<128x128xf32>
    %c0_11 = arith.constant 0 : index
    %c0_12 = arith.constant 0 : index
    %22 = vector.load %arg6[%c0_11, %c0_12] : memref<128x1xf32, #tpu.memory_space<vmem>>, vector<128x1xf32>
    %c0_13 = arith.constant 0 : index
    %c0_14 = arith.constant 0 : index
    %23 = vector.load %arg7[%c0_13, %c0_14] : memref<128x1xf32, #tpu.memory_space<vmem>>, vector<128x1xf32>
    %24 = tpu.transpose %23, [1, 0] : vector<128x1xf32> -> vector<1x128xf32>
    %25 = vector.broadcast %22 : vector<128x1xf32> to vector<128x128xf32>
    %26 = vector.broadcast %24 : vector<1x128xf32> to vector<128x128xf32>
    %27 = arith.cmpf oeq, %25, %26 : vector<128x128xf32>
    %c128_i32 = arith.constant 128 : i32
    %28 = arith.muli %arg1, %c128_i32 : i32
    %29 = tpu.iota {dimensions = array<i32: 1>} : vector<128x128xi32>
    %30 = vector.broadcast %28 : i32 to vector<128x128xi32>
    %31 = arith.addi %30, %29 : vector<128x128xi32>
    %c0_15 = arith.constant 0 : index
    %32 = memref.load %arg3[%c0_15] : memref<1xi32, #tpu.memory_space<smem>>
    %33 = vector.broadcast %32 : i32 to vector<128x128xi32>
    %34 = arith.cmpi slt, %31, %33 : vector<128x128xi32>
    %35 = arith.andi %27, %34 : vector<128x128xi1>
    %cst_16 = arith.constant 0xFF800000 : f32
    %36 = vector.broadcast %cst_16 : f32 to vector<128x128xf32>
    %37 = arith.select %35, %21, %36 : vector<128x128xi1>, vector<128x128xf32>
    %cst_17 = arith.constant dense<0xFF800000> : vector<128xf32>
    %38 = vector.multi_reduction <maximumf>, %37, %cst_17 [1] : vector<128x128xf32> to vector<128xf32>
    %39 = vector.shape_cast %38 : vector<128xf32> to vector<128x1xf32>
    %cst_18 = arith.constant dense<true> : vector<128x128xi1>
    %40 = arith.xori %27, %cst_18 : vector<128x128xi1>
    %41 = arith.andi %40, %34 : vector<128x128xi1>
    %cst_19 = arith.constant 0x7F800000 : f32
    %42 = vector.broadcast %cst_19 : f32 to vector<128x128xf32>
    %43 = arith.select %41, %21, %42 : vector<128x128xi1>, vector<128x128xf32>
    %cst_20 = arith.constant dense<0x7F800000> : vector<128xf32>
    %44 = vector.multi_reduction <minimumf>, %43, %cst_20 [1] : vector<128x128xf32> to vector<128xf32>
    %45 = vector.shape_cast %44 : vector<128xf32> to vector<128x1xf32>
    %c0_21 = arith.constant 0 : index
    %c0_22 = arith.constant 0 : index
    %46 = vector.load %arg11[%c0_21, %c0_22] : memref<128x1xf32, #tpu.memory_space<vmem>>, vector<128x1xf32>
    %47 = arith.maximumf %46, %39 : vector<128x1xf32>
    %c0_23 = arith.constant 0 : index
    %c0_24 = arith.constant 0 : index
    %48 = vector.load %arg11[%c0_23, %c0_24] : memref<128x1xf32, #tpu.memory_space<vmem>>, vector<128x1xf32>
    tpu.vector_store %arg11[%c0_23, %c0_24], %47 {strides = array<i32>} : memref<128x1xf32, #tpu.memory_space<vmem>>, vector<128x1xf32>,
    %c0_25 = arith.constant 0 : index
    %c0_26 = arith.constant 0 : index
    %49 = vector.load %arg12[%c0_25, %c0_26] : memref<128x1xf32, #tpu.memory_space<vmem>>, vector<128x1xf32>
    %50 = arith.minimumf %49, %45 : vector<128x1xf32>
    %c0_27 = arith.constant 0 : index
    %c0_28 = arith.constant 0 : index
    %51 = vector.load %arg12[%c0_27, %c0_28] : memref<128x1xf32, #tpu.memory_space<vmem>>, vector<128x1xf32>
    tpu.vector_store %arg12[%c0_27, %c0_28], %50 {strides = array<i32>} : memref<128x1xf32, #tpu.memory_space<vmem>>, vector<128x1xf32>,
    %c1_i32 = arith.constant 1 : i32
    %52 = arith.cmpi eq, %arg1, %c1_i32 : i32
    %53 = arith.extui %52 : i1 to i32
    %c0_i32_29 = arith.constant 0 : i32
    %54 = arith.cmpi ne, %53, %c0_i32_29 : i32
    scf.if %54 {
      %c0_30 = arith.constant 0 : index
      %c0_31 = arith.constant 0 : index
      %55 = vector.load %arg11[%c0_30, %c0_31] : memref<128x1xf32, #tpu.memory_space<vmem>>, vector<128x1xf32>
      %c0_32 = arith.constant 0 : index
      %c0_33 = arith.constant 0 : index
      %56 = vector.load %arg12[%c0_32, %c0_33] : memref<128x1xf32, #tpu.memory_space<vmem>>, vector<128x1xf32>
      %57 = arith.subf %55, %56 : vector<128x1xf32>
      %c0_34 = arith.constant 0 : index
      %58 = memref.load %arg2[%c0_34] : memref<1xf32, #tpu.memory_space<smem>>
      %59 = vector.broadcast %58 : f32 to vector<128x1xf32>
      %60 = arith.addf %57, %59 : vector<128x1xf32>
      %cst_35 = arith.constant 0.000000e+00 : f32
      %61 = vector.broadcast %cst_35 : f32 to vector<128x1xf32>
      %62 = arith.maximumf %60, %61 : vector<128x1xf32>
      %63 = tpu.transpose %55, [1, 0] : vector<128x1xf32> -> vector<1x128xf32>
      %c0_36 = arith.constant 0 : index
      %c0_37 = arith.constant 0 : index
      %64 = vector.load %arg8[%c0_36, %c0_37] : memref<1x128xf32, #tpu.memory_space<vmem>>, vector<1x128xf32>
      tpu.vector_store %arg8[%c0_36, %c0_37], %63 {strides = array<i32>} : memref<1x128xf32, #tpu.memory_space<vmem>>, vector<1x128xf32>,
      %65 = tpu.transpose %56, [1, 0] : vector<128x1xf32> -> vector<1x128xf32>
      %c0_38 = arith.constant 0 : index
      %c0_39 = arith.constant 0 : index
      %66 = vector.load %arg9[%c0_38, %c0_39] : memref<1x128xf32, #tpu.memory_space<vmem>>, vector<1x128xf32>
      tpu.vector_store %arg9[%c0_38, %c0_39], %65 {strides = array<i32>} : memref<1x128xf32, #tpu.memory_space<vmem>>, vector<1x128xf32>,
      %67 = tpu.transpose %62, [1, 0] : vector<128x1xf32> -> vector<1x128xf32>
      %c0_40 = arith.constant 0 : index
      %c0_41 = arith.constant 0 : index
      %68 = vector.load %arg10[%c0_40, %c0_41] : memref<1x128xf32, #tpu.memory_space<vmem>>, vector<1x128xf32>
      tpu.vector_store %arg10[%c0_40, %c0_41], %67 {strides = array<i32>} : memref<1x128xf32, #tpu.memory_space<vmem>>, vector<1x128xf32>,
    } else {
    }
    return
  }
  func.func @transform_0(%arg0: i32, %arg1: i32) -> i32 {
    %c0_i32 = arith.constant 0 : i32
    %c0_i32_0 = arith.constant 0 : i32
    return %c0_i32 : i32
  }
  func.func @transform_1(%arg0: i32, %arg1: i32) -> i32 {
    %c0_i32 = arith.constant 0 : i32
    %c0_i32_0 = arith.constant 0 : i32
    return %c0_i32 : i32
  }
  func.func @transform_2(%arg0: i32, %arg1: i32) -> (i32, i32) {
    %c0_i32 = arith.constant 0 : i32
    %c0_i32_0 = arith.constant 0 : i32
    return %arg0, %c0_i32 : i32, i32
  }
  func.func @transform_3(%arg0: i32, %arg1: i32) -> (i32, i32) {
    %c0_i32 = arith.constant 0 : i32
    %c0_i32_0 = arith.constant 0 : i32
    return %arg1, %c0_i32 : i32, i32
  }
  func.func @transform_4(%arg0: i32, %arg1: i32) -> (i32, i32) {
    %c0_i32 = arith.constant 0 : i32
    %c0_i32_0 = arith.constant 0 : i32
    return %arg0, %c0_i32 : i32, i32
  }
  func.func @transform_5(%arg0: i32, %arg1: i32) -> (i32, i32) {
    %c0_i32 = arith.constant 0 : i32
    %c0_i32_0 = arith.constant 0 : i32
    return %arg1, %c0_i32 : i32, i32
  }
  func.func @transform_6(%arg0: i32, %arg1: i32) -> (i32, i32) {
    %c0_i32 = arith.constant 0 : i32
    %c0_i32_0 = arith.constant 0 : i32
    return %c0_i32, %arg0 : i32, i32
  }
  func.func @transform_7(%arg0: i32, %arg1: i32) -> (i32, i32) {
    %c0_i32 = arith.constant 0 : i32
    %c0_i32_0 = arith.constant 0 : i32
    return %c0_i32, %arg0 : i32, i32
  }
  func.func @transform_8(%arg0: i32, %arg1: i32) -> (i32, i32) {
    %c0_i32 = arith.constant 0 : i32
    %c0_i32_0 = arith.constant 0 : i32
    return %c0_i32, %arg0 : i32, i32
  }
}

</mosaic_0001>

<bundles_post_ra>
// kernel: triplet_forward.1
= control target key start
LH: loop header
LB: loop body
LE: loop exit
PB: predicated region body
PF: predicated region fallthrough
CT: control target
= control target key end

     0   :  { %s2308_s9 = smov 0   ;;  %s2310_s10 = smov 0   ;;  %s3235_s0 = inlined_call_operand.<no memory space> [shape: f32[1], index: 0, kind: input, shape index: {}]   ;;  %s3236_s1 = inlined_call_operand.<no memory space> [shape: s32[1], index: 1, kind: input, shape index: {}]   ;;  %s3237_s2 = inlined_call_operand.vmem [shape: bf16[256,64], index: 2, kind: input, shape index: {}, may-alias: {2,3}]   ;;  %s3238_s3 = inlined_call_operand.vmem [shape: bf16[256,64], index: 3, kind: input, shape index: {}, may-alias: {2,3}]   ;;  %s3239_s4 = inlined_call_operand.vmem [shape: f32[256,1], index: 4, kind: input, shape index: {}, may-alias: {4,5}]   ;;  %s3240_s5 = inlined_call_operand.vmem [shape: f32[256,1], index: 5, kind: input, shape index: {}, may-alias: {4,5}]   ;;  %s3241_s6 = inlined_call_operand.vmem [shape: f32[1,256], index: 6, kind: output, shape index: {0}]   ;;  %s3242_s7 = inlined_call_operand.vmem [shape: f32[1,256], index: 7, kind: output, shape index: {1}]   ;;  %s3243_s8 = inlined_call_operand.vmem [shape: f32[1,256], index: 8, kind: output, shape index: {2}]  }
   0x1   :  { %14 = sst [smem:[#allocation5]] %s3235_s0  ;;  %s2312_s11 = smov 0  }
   0x2   :  { %15 = sst [smem:[#allocation6]] %s3236_s1  ;;  %s2314_s12 = smov 0  }
   0x3   :  { %s2316_s13 = smov 0  }
   0x4 LB: > { %s30_s0 = sadd.s32 1, %s2243_s11  ;;  %s33_s1 = sadd.s32 1, %s2247_s12  ;;  %s2251_s13 = sphi %s2316_s13, %s21_s13   ;;  %s2247_s12 = sphi %s2314_s12, %s3265_s12   ;;  %s2243_s11 = sphi %s2312_s11, %s3264_s11   ;;  %s2239_s10 = sphi %s2310_s10, %s3263_s10   ;;  %s2235_s9 = sphi %s2308_s9, %s3262_s9  }
   0x5   : > { %p31_p0 = scmp.ge.s32.totalorder %s30_s0, 2  ;;  %p1969_p1 = scmp.ge.s32.totalorder %s2251_s13, 1 }
   0x6   : > { %p315_p2 = scmp.lt.s32.totalorder %s2251_s13, 5 }
   0x7   : > { %s3267_s0 = smov (%p31_p0, %s30_s0), 0  ;;  %s3269_s1 = smov (!%p31_p0, %s33_s1), %s2247_s12 }
   0x8   : > { %p316_p3 = pnand %p1969_p1, %p315_p2  ;;  %p35_p4 = scmp.ge.s32.totalorder %s3269_s1, 2 }
   0x9   : > { %s1970_s14 = sshll.u32 (!%p316_p3), %s2239_s10, 4  ;;  %s1972_s15 = sshll.u32 (!%p316_p3), %s2235_s9, 4 }
   0xa   : > { %s3271_s1 = smov (%p35_p4, %s3269_s1), 0  ;;  %319 = sbr.rel (%p316_p3) target bundleno = 991 (0x3df), region = 44 }
   0xb   : > { %p369_p5 = scmp.lt.s32.totalorder (!%p316_p3), %s1970_s14, 31  ;;  %p375_p6 = scmp.lt.s32.totalorder (!%p316_p3), %s1972_s15, 31 }
   0xc   : > { %p392_p7 = scmp.lt.s32.totalorder (!%p316_p3), %s2239_s10, 1  ;;  %p1978_p8 = scmp.ne.s32.totalorder (!%p316_p3), %s2235_s9, 0 }
   0xf   : > { %s3273_s14 = smov (!%p369_p5, %s1970_s14), 31  ;;  %s3275_s15 = smov (!%p375_p6, %s1972_s15), 31 }
  0x10   : > { %s1971_s16 = sshll.u32 %s3273_s14, 2  ;;  %s1975_s17 = sshll.u32 %s3273_s14, 3 }
  0x11   : > { %s2348_s20 = scalar_lea.vmem %s3237_s2, %s1971_s16  ;;  %s1973_s21 = sshll.u32 %s3275_s15, 2 }
  0x12   : > { %s2353_s24 = scalar_lea.vmem %s3238_s3, %s1973_s21  ;;  %s2358_s27 = scalar_lea.vmem %s3239_s4, %s1975_s17 }
  0x13   : > { %s1977_s28 = sshll.u32 %s3275_s15, 3  ;;  %s3277_s10 = smov (!%p392_p7, %s2239_s10), 1 }
  0x14   : > { %s2363_s14 = scalar_lea.vmem %s3240_s5, %s1977_s28  ;;  %s394_s19 = scalar_lea.vmem %s3241_s6, %s3277_s10 }
  0x15   : > { %s397_s17 = scalar_lea.vmem %s3242_s7, %s3277_s10  ;;  %s400_s25 = scalar_lea.vmem %s3243_s8, %s3277_s10 }
  0x16   : > { %404 = sbr.rel (%p1978_p8) target bundleno = 190 (0xbe), region = 48 }
  0x1b   : > { %v2072_v0 = vld [vmem:[%s2348_s20] sm:$0xff]   ;;  %v2104_v1 = vld [vmem:[%s2348_s20 + $0x10] sm:$0xff]   ;;  %v2103_v2 = vld [vmem:[%s2348_s20 + $0x8] sm:$0xff]   ;;  %vm486_vm0 = vcmask 523264   ;;  %vm405_vm1 = vcmask 7168   ;;  %v2253_v56 = vmov -inf  }
  0x1c   : > { %v2073_v3 = vunpack.c.l.bf16 %v2072_v0  ;;  %v2081_v4 = vunpack.c.l.bf16 %v2104_v1  ;;  %v2077_v5 = vunpack.c.l.bf16 %v2103_v2  ;;  %v2074_v6 = vunpack.c.h.bf16 %v2072_v0  ;;  %v2105_v18 = vld [vmem:[%s2348_s20 + $0x18] sm:$0xff]   ;;  %v2106_v19 = vld [vmem:[%s2348_s20 + $0x20] sm:$0xff]   ;;  %v2107_v29 = vld [vmem:[%s2348_s20 + $0x28] sm:$0xff]   ;;  %406 = vst.msk [vmem:[#allocation2] sm:$0xff] %vm405_vm1, %v2253_v56 }
  0x1d   : > { %v2082_v10 = vunpack.c.h.bf16 %v2104_v1  ;;  %v2078_v11 = vunpack.c.h.bf16 %v2103_v2  ;;  %v2085_v22 = vunpack.c.l.bf16 %v2105_v18  ;;  %v2089_v23 = vunpack.c.l.bf16 %v2106_v19  ;;  %v2108_v39 = vld [vmem:[%s2348_s20 + $0x30] sm:$0xff]   ;;  %v2109_v40 = vld [vmem:[%s2348_s20 + $0x38] sm:$0xff]   ;;  %407 = vst.msk [vmem:[#allocation2 + $0x8] sm:$0xff] %vm405_vm1, %v2253_v56 }
  0x1e   : > { %v470_v7 = vmul.f32 %v2073_v3, %v2073_v3  ;;  %v474_v8 = vmul.f32 %v2081_v4, %v2081_v4  ;;  %v472_v9 = vmul.f32 %v2077_v5, %v2077_v5  ;;  %v471_v15 = vmul.f32 %v2074_v6, %v2074_v6  ;;  %408 = vst.msk [vmem:[#allocation2 + $0x10] sm:$0xff] %vm405_vm1, %v2253_v56 }
  0x1f   : > { %v475_v16 = vmul.f32 %v2082_v10, %v2082_v10  ;;  %v473_v17 = vmul.f32 %v2078_v11, %v2078_v11  ;;  %v2086_v25 = vunpack.c.h.bf16 %v2105_v18  ;;  %v476_v26 = vmul.f32 %v2085_v22, %v2085_v22  ;;  %409 = vst.msk [vmem:[#allocation2 + $0x18] sm:$0xff] %vm405_vm1, %v2253_v56 }
  0x20   : > { %v487_v12 = vsel %vm486_vm0, %v470_v7, 0.0  ;;  %v499_v13 = vsel %vm486_vm0, %v474_v8, 0.0  ;;  %v493_v14 = vsel %vm486_vm0, %v472_v9, 0.0  ;;  %v490_v20 = vsel %vm486_vm0, %v471_v15, 0.0  ;;  %410 = vst.msk [vmem:[#allocation2 + $0x20] sm:$0xff] %vm405_vm1, %v2253_v56 }
  0x21   : > { %488 = vadd.xlane.f32.xlu0 %v487_v12  ;;  %500 = vadd.xlane.f32.xlu2 %v499_v13  ;;  %v502_v21 = vsel %vm486_vm0, %v475_v16, 0.0  ;;  %v496_v24 = vsel %vm486_vm0, %v473_v17, 0.0  ;;  %v478_v27 = vmul.f32 %v2089_v23, %v2089_v23  ;;  %v477_v28 = vmul.f32 %v2086_v25, %v2086_v25  ;;  %411 = vst.msk [vmem:[#allocation2 + $0x28] sm:$0xff] %vm405_vm1, %v2253_v56 }
  0x22   : > { %494 = vadd.xlane.f32.xlu1 %v493_v14  ;;  %v505_v30 = vsel %vm486_vm0, %v476_v26, 0.0  ;;  %v2090_v32 = vunpack.c.h.bf16 %v2106_v19  ;;  %v2094_v33 = vunpack.c.h.bf16 %v2107_v29  ;;  %v2093_v35 = vunpack.c.l.bf16 %v2107_v29  ;;  %412 = vst.msk [vmem:[#allocation2 + $0x30] sm:$0xff] %vm405_vm1, %v2253_v56 }
  0x23   : > { %v511_v31 = vsel %vm486_vm0, %v478_v27, 0.0  ;;  %v508_v34 = vsel %vm486_vm0, %v477_v28, 0.0  ;;  %v2097_v43 = vunpack.c.l.bf16 %v2108_v39  ;;  %v2101_v44 = vunpack.c.l.bf16 %v2109_v40  ;;  %413 = vst.msk [vmem:[#allocation2 + $0x38] sm:$0xff] %vm405_vm1, %v2253_v56 }
  0x24   : > { %v479_v36 = vmul.f32 %v2090_v32, %v2090_v32  ;;  %v481_v37 = vmul.f32 %v2094_v33, %v2094_v33  ;;  %v480_v38 = vmul.f32 %v2093_v35, %v2093_v35  ;;  %v2098_v46 = vunpack.c.h.bf16 %v2108_v39  ;;  %414 = vst.msk [vmem:[#allocation2 + $0x40] sm:$0xff] %vm405_vm1, %v2253_v56 }
  0x25   : > { %v482_v47 = vmul.f32 %v2097_v43, %v2097_v43  ;;  %v484_v48 = vmul.f32 %v2101_v44, %v2101_v44  ;;  %v2102_v52 = vunpack.c.h.bf16 %v2109_v40  ;;  %415 = vst.msk [vmem:[#allocation2 + $0x48] sm:$0xff] %vm405_vm1, %v2253_v56  ;;  %v2254_v57 = vmov inf  }
  0x26   : > { %v514_v41 = vsel %vm486_vm0, %v479_v36, 0.0  ;;  %v520_v42 = vsel %vm486_vm0, %v481_v37, 0.0  ;;  %v517_v45 = vsel %vm486_vm0, %v480_v38, 0.0  ;;  %v483_v49 = vmul.f32 %v2098_v46, %v2098_v46  ;;  %416 = vst.msk [vmem:[#allocation2 + $0x50] sm:$0xff] %vm405_vm1, %v2253_v56 }
  0x27   : > { %v523_v50 = vsel %vm486_vm0, %v482_v47, 0.0  ;;  %v529_v51 = vsel %vm486_vm0, %v484_v48, 0.0  ;;  %v485_v54 = vmul.f32 %v2102_v52, %v2102_v52  ;;  %417 = vst.msk [vmem:[#allocation2 + $0x58] sm:$0xff] %vm405_vm1, %v2253_v56 }
  0x28   : > { %v526_v53 = vsel %vm486_vm0, %v483_v49, 0.0  ;;  %418 = vst.msk [vmem:[#allocation2 + $0x60] sm:$0xff] %vm405_vm1, %v2253_v56 }
  0x29   : > { %491 = vadd.xlane.f32.xlu0 %v490_v20  ;;  %503 = vadd.xlane.f32.xlu2 %v502_v21  ;;  %v532_v55 = vsel %vm486_vm0, %v485_v54, 0.0  ;;  %419 = vst.msk [vmem:[#allocation2 + $0x68] sm:$0xff] %vm405_vm1, %v2253_v56 }
  0x2a   : > { %497 = vadd.xlane.f32.xlu1 %v496_v24  ;;  %420 = vst.msk [vmem:[#allocation2 + $0x70] sm:$0xff] %vm405_vm1, %v2253_v56 }
  0x2b   : > { %421 = vst.msk [vmem:[#allocation2 + $0x78] sm:$0xff] %vm405_vm1, %v2253_v56 }
  0x2c   : > { %422 = vst.msk [vmem:[#allocation3] sm:$0xff] %vm405_vm1, %v2254_v57 }
  0x2d   : > { %423 = vst.msk [vmem:[#allocation3 + $0x8] sm:$0xff] %vm405_vm1, %v2254_v57 }
  0x2e   : > { %424 = vst.msk [vmem:[#allocation3 + $0x10] sm:$0xff] %vm405_vm1, %v2254_v57 }
  0x2f   : > { %425 = vst.msk [vmem:[#allocation3 + $0x18] sm:$0xff] %vm405_vm1, %v2254_v57 }
  0x30   : > { %426 = vst.msk [vmem:[#allocation3 + $0x20] sm:$0xff] %vm405_vm1, %v2254_v57 }
  0x31   : > { %506 = vadd.xlane.f32.xlu0 %v505_v30  ;;  %512 = vadd.xlane.f32.xlu2 %v511_v31  ;;  %427 = vst.msk [vmem:[#allocation3 + $0x28] sm:$0xff] %vm405_vm1, %v2254_v57 }
  0x32   : > { %509 = vadd.xlane.f32.xlu1 %v508_v34  ;;  %428 = vst.msk [vmem:[#allocation3 + $0x30] sm:$0xff] %vm405_vm1, %v2254_v57 }
  0x33   : > { %429 = vst.msk [vmem:[#allocation3 + $0x38] sm:$0xff] %vm405_vm1, %v2254_v57 }
  0x34   : > { %430 = vst.msk [vmem:[#allocation3 + $0x40] sm:$0xff] %vm405_vm1, %v2254_v57 }
  0x35   : > { %431 = vst.msk [vmem:[#allocation3 + $0x48] sm:$0xff] %vm405_vm1, %v2254_v57 }
  0x36   : > { %432 = vst.msk [vmem:[#allocation3 + $0x50] sm:$0xff] %vm405_vm1, %v2254_v57 }
  0x37   : > { %433 = vst.msk [vmem:[#allocation3 + $0x58] sm:$0xff] %vm405_vm1, %v2254_v57 }
  0x38   : > { %434 = vst.msk [vmem:[#allocation3 + $0x60] sm:$0xff] %vm405_vm1, %v2254_v57 }
  0x39   : > { %515 = vadd.xlane.f32.xlu0 %v514_v41  ;;  %521 = vadd.xlane.f32.xlu2 %v520_v42  ;;  %435 = vst.msk [vmem:[#allocation3 + $0x68] sm:$0xff] %vm405_vm1, %v2254_v57 }
  0x3a   : > { %518 = vadd.xlane.f32.xlu1 %v517_v45  ;;  %436 = vst.msk [vmem:[#allocation3 + $0x70] sm:$0xff] %vm405_vm1, %v2254_v57 }
  0x3b   : > { %437 = vst.msk [vmem:[#allocation3 + $0x78] sm:$0xff] %vm405_vm1, %v2254_v57 }
  0x41   : > { %524 = vadd.xlane.f32.xlu0 %v523_v50  ;;  %530 = vadd.xlane.f32.xlu2 %v529_v51 }
  0x42   : > { %527 = vadd.xlane.f32.xlu1 %v526_v53 }
  0x49   : > { %533 = vadd.xlane.f32.xlu0 %v532_v55 }
  0x94   : > { %v489_v58 = vpop.xlane.xlu0 %488  ;;  %v501_v59 = vpop.xlane.xlu2 %500 }
  0x95   : > { %535 = vst.msk [vmem:[#allocation4] sm:$0xff] %vm405_vm1, %v489_v58  ;;  %v495_v60 = vpop.xlane.xlu1 %494 }
  0x96   : > { %539 = vst.msk [vmem:[#allocation4 + $0x20] sm:$0xff] %vm405_vm1, %v501_v59 }
  0x97   : > { %537 = vst.msk [vmem:[#allocation4 + $0x10] sm:$0xff] %vm405_vm1, %v495_v60 }
  0x9c   : > { %v492_v61 = vpop.xlane.xlu0 %491  ;;  %v504_v62 = vpop.xlane.xlu2 %503 }
  0x9d   : > { %536 = vst.msk [vmem:[#allocation4 + $0x8] sm:$0xff] %vm405_vm1, %v492_v61  ;;  %v498_v63 = vpop.xlane.xlu1 %497 }
  0x9e   : > { %540 = vst.msk [vmem:[#allocation4 + $0x28] sm:$0xff] %vm405_vm1, %v504_v62 }
  0x9f   : > { %538 = vst.msk [vmem:[#allocation4 + $0x18] sm:$0xff] %vm405_vm1, %v498_v63 }
  0xa4   : > { %v507_v0 = vpop.xlane.xlu0 %506  ;;  %v513_v1 = vpop.xlane.xlu2 %512 }
  0xa5   : > { %541 = vst.msk [vmem:[#allocation4 + $0x30] sm:$0xff] %vm405_vm1, %v507_v0  ;;  %v510_v2 = vpop.xlane.xlu1 %509 }
  0xa6   : > { %543 = vst.msk [vmem:[#allocation4 + $0x40] sm:$0xff] %vm405_vm1, %v513_v1 }
  0xa7   : > { %542 = vst.msk [vmem:[#allocation4 + $0x38] sm:$0xff] %vm405_vm1, %v510_v2 }
  0xac   : > { %v516_v3 = vpop.xlane.xlu0 %515  ;;  %v522_v4 = vpop.xlane.xlu2 %521 }
  0xad   : > { %544 = vst.msk [vmem:[#allocation4 + $0x48] sm:$0xff] %vm405_vm1, %v516_v3  ;;  %v519_v5 = vpop.xlane.xlu1 %518 }
  0xae   : > { %546 = vst.msk [vmem:[#allocation4 + $0x58] sm:$0xff] %vm405_vm1, %v522_v4 }
  0xaf   : > { %545 = vst.msk [vmem:[#allocation4 + $0x50] sm:$0xff] %vm405_vm1, %v519_v5 }
  0xb4   : > { %v525_v6 = vpop.xlane.xlu0 %524  ;;  %v531_v7 = vpop.xlane.xlu2 %530 }
  0xb5   : > { %547 = vst.msk [vmem:[#allocation4 + $0x60] sm:$0xff] %vm405_vm1, %v525_v6  ;;  %v528_v8 = vpop.xlane.xlu1 %527 }
  0xb6   : > { %549 = vst.msk [vmem:[#allocation4 + $0x70] sm:$0xff] %vm405_vm1, %v531_v7 }
  0xb7   : > { %548 = vst.msk [vmem:[#allocation4 + $0x68] sm:$0xff] %vm405_vm1, %v528_v8 }
  0xbc   : > { %v534_v9 = vpop.xlane.xlu0 %533 }
  0xbd   : > { %550 = vst.msk [vmem:[#allocation4 + $0x78] sm:$0xff] %vm405_vm1, %v534_v9 }
  0xbe PF: > { %v571_v10 = vld [vmem:[%s2353_s24 + $0x10] sm:$0xff]   ;;  %v567_v11 = vld [vmem:[%s2353_s24] sm:$0xff]   ;;  %v569_v14 = vld [vmem:[%s2353_s24 + $0x8] sm:$0xff]   ;;  %vm663_vm2 = vcmask 523264   ;;  %v2255_v38 = vmov 0   ;;  %vm2256_vm0 = vmmov 1  }
  0xbf   : > { %v765_v12 = vunpack.c.l.bf16 %v571_v10  ;;  %v761_v13 = vunpack.c.l.bf16 %v567_v11  ;;  %v763_v15 = vunpack.c.l.bf16 %v569_v14  ;;  %v766_v18 = vunpack.c.h.bf16 %v571_v10  ;;  %v575_v27 = vld [vmem:[%s2353_s24 + $0x20] sm:$0xff]   ;;  %v573_v28 = vld [vmem:[%s2353_s24 + $0x18] sm:$0xff]   ;;  %2178 = vset.pattern.permute.xlu2 %v2255_v38  ;;  %v578_v39 = vld [vmem:[%s2353_s24 + $0x2c] sm:$0xff]   ;;  %2179 = vset.pattern.permute.xlu0 %v2255_v38  ;;  %p2052_p9 = scmp.ne.s32.totalorder %s2235_s9, 1 }
  0xc0   : > { %v762_v19 = vunpack.c.h.bf16 %v567_v11  ;;  %v764_v26 = vunpack.c.h.bf16 %v569_v14  ;;  %v769_v32 = vunpack.c.l.bf16 %v575_v27  ;;  %v767_v33 = vunpack.c.l.bf16 %v573_v28  ;;  %v577_v41 = vld [vmem:[%s2353_s24 + $0x28] sm:$0xf]  ;;  %v581_v50 = vld [vmem:[%s2353_s24 + $0x38] sm:$0xff]   ;;  %v580_v52 = vld [vmem:[%s2353_s24 + $0x34] sm:$0xf]  ;;  %s1688_s26 = sld [smem:[#allocation5]] (!%p2052_p9) }
  0xc1   : > { %v781_v16 = vmul.f32 %v765_v12, %v765_v12  ;;  %v777_v17 = vmul.f32 %v761_v13, %v761_v13  ;;  %v779_v20 = vmul.f32 %v763_v15, %v763_v15  ;;  %v782_v24 = vmul.f32 %v766_v18, %v766_v18  ;;  %v2070_v62 = vld [vmem:[%s2353_s24 + $0x38] sm:$0xff]  ;;  %v2069_v5 = vld [vmem:[%s2353_s24 + $0x30] sm:$0xff]  ;;  %v2068_v8 = vld [vmem:[%s2353_s24 + $0x28] sm:$0xff] }
  0xc2   : > { %v778_v25 = vmul.f32 %v762_v19, %v762_v19  ;;  %v780_v29 = vmul.f32 %v764_v26, %v764_v26  ;;  %v768_v35 = vunpack.c.h.bf16 %v573_v28  ;;  %v785_v36 = vmul.f32 %v769_v32, %v769_v32  ;;  %v2067_v10 = vld [vmem:[%s2353_s24 + $0x20] sm:$0xff]  ;;  %v842_v13 = vld [vmem:[#allocation4 + $0x8] sm:$0xff]  ;;  %v2066_v14 = vld [vmem:[%s2353_s24 + $0x18] sm:$0xff] }
  0xc3   : > { %v805_v21 = vsel %vm663_vm2, %v781_v16, 0.0  ;;  %v793_v22 = vsel %vm663_vm2, %v777_v17, 0.0  ;;  %v799_v23 = vsel %vm663_vm2, %v779_v20, 0.0  ;;  %v808_v30 = vsel %vm663_vm2, %v782_v24, 0.0  ;;  %v841_v11 = vld [vmem:[#allocation4] sm:$0xff]  ;;  %v843_v15 = vld [vmem:[#allocation4 + $0x10] sm:$0xff] }
  0xc4   : > { %806 = vadd.xlane.f32.xlu2 %v805_v21  ;;  %794 = vadd.xlane.f32.xlu0 %v793_v22  ;;  %v796_v31 = vsel %vm663_vm2, %v778_v25, 0.0  ;;  %v802_v34 = vsel %vm663_vm2, %v780_v29, 0.0  ;;  %v783_v37 = vmul.f32 %v767_v33, %v767_v33  ;;  %v784_v40 = vmul.f32 %v768_v35, %v768_v35  ;;  %v846_v17 = vld [vmem:[#allocation4 + $0x28] sm:$0xff]  ;;  %v2065_v18 = vld [vmem:[%s2353_s24 + $0x10] sm:$0xff]  ;;  %v844_v19 = vld [vmem:[#allocation4 + $0x18] sm:$0xff] }
  0xc5   : > { %800 = vadd.xlane.f32.xlu1 %v799_v23  ;;  %v817_v42 = vsel %vm663_vm2, %v785_v36, 0.0  ;;  %v772_v44 = vunpack.c.l.bf16 %v578_v39  ;;  %v770_v45 = vunpack.c.h.bf16 %v575_v27  ;;  %v771_v47 = vunpack.c.l.bf16 %v577_v41  ;;  %v848_v21 = vld [vmem:[#allocation4 + $0x38] sm:$0xff]  ;;  %v845_v22 = vld [vmem:[#allocation4 + $0x20] sm:$0xff]  ;;  %v2064_v23 = vld [vmem:[%s2353_s24 + $0x8] sm:$0xff] }
  0xc6   : > { %v811_v43 = vsel %vm663_vm2, %v783_v37, 0.0  ;;  %v814_v46 = vsel %vm663_vm2, %v784_v40, 0.0  ;;  %v775_v55 = vunpack.c.l.bf16 %v581_v50  ;;  %v773_v56 = vunpack.c.h.bf16 %v578_v39  ;;  %v850_v25 = vld [vmem:[#allocation4 + $0x48] sm:$0xff]  ;;  %v847_v26 = vld [vmem:[#allocation4 + $0x30] sm:$0xff]  ;;  %v2063_v27 = vld [vmem:[%s2353_s24] sm:$0xff]  ;;  %s2051_s24 = sshll.u32 %s2235_s9, 7 }
  0xc7   : > { %v788_v48 = vmul.f32 %v772_v44, %v772_v44  ;;  %v786_v49 = vmul.f32 %v770_v45, %v770_v45  ;;  %v787_v51 = vmul.f32 %v771_v47, %v771_v47  ;;  %v774_v58 = vunpack.c.l.bf16 %v580_v52  ;;  %v852_v29 = vld [vmem:[#allocation4 + $0x58] sm:$0xff]  ;;  %v849_v32 = vld [vmem:[#allocation4 + $0x40] sm:$0xff]  ;;  %v854_v33 = vld [vmem:[#allocation4 + $0x68] sm:$0xff] }
  0xc8   : > { %v791_v59 = vmul.f32 %v775_v55, %v775_v55  ;;  %v789_v60 = vmul.f32 %v773_v56, %v773_v56  ;;  %v776_v1 = vunpack.c.h.bf16 %v581_v50  ;;  %v710_v3 = vsel %vm663_vm2, %v2070_v62, 0  ;;  %v2057_v35 = vld [vmem:[%s2348_s20 + $0x10] sm:$0xff]  ;;  %v856_v37 = vld [vmem:[#allocation4 + $0x78] sm:$0xff]  ;;  %v2060_v39 = vld [vmem:[%s2348_s20 + $0x28] sm:$0xff] }
  0xc9   : > { %v826_v53 = vsel %vm663_vm2, %v788_v48, 0.0  ;;  %v820_v54 = vsel %vm663_vm2, %v786_v49, 0.0  ;;  %v823_v57 = vsel %vm663_vm2, %v787_v51, 0.0  ;;  %v790_v61 = vmul.f32 %v774_v58, %v774_v58  ;;  %2111 = vmatpush.bf16.xpose.msra.mxu2 %v710_v3  ;;  %2112 = vmatpush.bf16.xpose.msra.mxu3 %v710_v3  ;;  %v851_v36 = vld [vmem:[#allocation4 + $0x50] sm:$0xff]  ;;  %v2062_v40 = vld [vmem:[%s2348_s20 + $0x38] sm:$0xff]  ;;  %v853_v41 = vld [vmem:[#allocation4 + $0x60] sm:$0xff] }
  0xca   : > { %v835_v63 = vsel %vm663_vm2, %v791_v59, 0.0  ;;  %v829_v0 = vsel %vm663_vm2, %v789_v60, 0.0  ;;  %v792_v4 = vmul.f32 %v776_v1, %v776_v1  ;;  %712 = vmatpush.bf16.xpose.msra.mxu0 %v710_v3  ;;  %2110 = vmatpush.bf16.xpose.msra.mxu1 %v710_v3  ;;  %v707_v7 = vsel %vm663_vm2, %v2069_v5, 0  ;;  %v2056_v44 = vld [vmem:[%s2348_s20 + $0x8] sm:$0xff]  ;;  %v2058_v45 = vld [vmem:[%s2348_s20 + $0x18] sm:$0xff]  ;;  %v1228_v50 = vld [vmem:[%s2358_s27 + $0x10] sm:$0xff] }
  0xcb   : > { %v832_v2 = vsel %vm663_vm2, %v790_v61, 0.0  ;;  %v704_v9 = vsel %vm663_vm2, %v2068_v8, 0  ;;  %v701_v12 = vsel %vm663_vm2, %v2067_v10, 0  ;;  %v698_v16 = vsel %vm663_vm2, %v2066_v14, 0  ;;  %v1227_v47 = vld [vmem:[%s2358_s27 + $0x8] sm:$0xff]  ;;  %v1230_v56 = vld [vmem:[%s2358_s27 + $0x20] sm:$0xff] }
  0xcc   : > { %809 = vadd.xlane.f32.xlu2 %v808_v30  ;;  %797 = vadd.xlane.f32.xlu0 %v796_v31  ;;  %v838_v6 = vsel %vm663_vm2, %v792_v4, 0.0  ;;  %v695_v20 = vsel %vm663_vm2, %v2065_v18, 0  ;;  %v692_v24 = vsel %vm663_vm2, %v2064_v23, 0  ;;  %v689_v28 = vsel %vm663_vm2, %v2063_v27, 0  ;;  %v2059_v30 = vld [vmem:[%s2348_s20 + $0x20] sm:$0xff]  ;;  %v2061_v31 = vld [vmem:[%s2348_s20 + $0x30] sm:$0xff] }
  0xcd   : > { %803 = vadd.xlane.f32.xlu1 %v802_v34  ;;  %v2055_v34 = vld [vmem:[%s2348_s20] sm:$0xff]  ;;  %v1232_v61 = vld [vmem:[%s2358_s27 + $0x30] sm:$0xff]  ;;  %v1243_v62 = vld [vmem:[%s2363_s14 + $0x8] sm:$0xff]  ;;  %s2611_s20 = sld [smem:[#allocation6]] }
  0xce   : > { %v1242_v60 = vld [vmem:[%s2363_s14] sm:$0xff]  ;;  %v1235_v8 = vld [vmem:[%s2358_s27 + $0x48] sm:$0xff]  ;;  %v1240_v23 = vld [vmem:[%s2358_s27 + $0x70] sm:$0xff] }
  0xcf   : > { %v1234_v4 = vld [vmem:[%s2358_s27 + $0x40] sm:$0xff] }
  0xd1   : > { %2114 = vmatpush.bf16.xpose.msra.mxu2 %v707_v7  ;;  %2115 = vmatpush.bf16.xpose.msra.mxu3 %v707_v7 }
  0xd2   : > { %713 = vmatpush.bf16.xpose.msra.mxu0 %v707_v7  ;;  %2113 = vmatpush.bf16.xpose.msra.mxu1 %v707_v7 }
  0xd4   : > { %818 = vadd.xlane.f32.xlu2 %v817_v42  ;;  %812 = vadd.xlane.f32.xlu0 %v811_v43  ;;  %v1226_v42 = vld [vmem:[%s2358_s27] sm:$0xff] }
  0xd5   : > { %815 = vadd.xlane.f32.xlu1 %v814_v46  ;;  %v855_v46 = vld [vmem:[#allocation4 + $0x70] sm:$0xff] }
  0xd9   : > { %2117 = vmatpush.bf16.xpose.msra.mxu2 %v704_v9  ;;  %2118 = vmatpush.bf16.xpose.msra.mxu3 %v704_v9 }
  0xda   : > { %714 = vmatpush.bf16.xpose.msra.mxu0 %v704_v9  ;;  %2116 = vmatpush.bf16.xpose.msra.mxu1 %v704_v9  ;;  %v1246_v9 = vld [vmem:[%s2363_s14 + $0x20] sm:$0xff] }
  0xdc   : > { %827 = vadd.xlane.f32.xlu2 %v826_v53  ;;  %821 = vadd.xlane.f32.xlu0 %v820_v54  ;;  %v1229_v53 = vld [vmem:[%s2358_s27 + $0x18] sm:$0xff] }
  0xdd   : > { %824 = vadd.xlane.f32.xlu1 %v823_v57  ;;  %v1231_v57 = vld [vmem:[%s2358_s27 + $0x28] sm:$0xff] }
  0xe1   : > { %2120 = vmatpush.bf16.xpose.msra.mxu2 %v701_v12  ;;  %2121 = vmatpush.bf16.xpose.msra.mxu3 %v701_v12 }
  0xe2   : > { %715 = vmatpush.bf16.xpose.msra.mxu0 %v701_v12  ;;  %2119 = vmatpush.bf16.xpose.msra.mxu1 %v701_v12 }
  0xe4   : > { %836 = vadd.xlane.f32.xlu2 %v835_v63  ;;  %830 = vadd.xlane.f32.xlu0 %v829_v0  ;;  %v1233_v0 = vld [vmem:[%s2358_s27 + $0x38] sm:$0xff] }
  0xe5   : > { %833 = vadd.xlane.f32.xlu1 %v832_v2  ;;  %v1244_v2 = vld [vmem:[%s2363_s14 + $0x10] sm:$0xff] }
  0xe9   : > { %2123 = vmatpush.bf16.xpose.msra.mxu2 %v698_v16  ;;  %2124 = vmatpush.bf16.xpose.msra.mxu3 %v698_v16 }
  0xea   : > { %716 = vmatpush.bf16.xpose.msra.mxu0 %v698_v16  ;;  %2122 = vmatpush.bf16.xpose.msra.mxu1 %v698_v16 }
  0xec   : > { %839 = vadd.xlane.f32.xlu0 %v838_v6  ;;  %v1245_v6 = vld [vmem:[%s2363_s14 + $0x18] sm:$0xff] }
  0xf1   : > { %2126 = vmatpush.bf16.xpose.msra.mxu2 %v695_v20  ;;  %2127 = vmatpush.bf16.xpose.msra.mxu3 %v695_v20 }
  0xf2   : > { %717 = vmatpush.bf16.xpose.msra.mxu0 %v695_v20  ;;  %2125 = vmatpush.bf16.xpose.msra.mxu1 %v695_v20  ;;  %v1249_v20 = vld [vmem:[%s2363_s14 + $0x38] sm:$0xff] }
  0xf9   : > { %2129 = vmatpush.bf16.xpose.msra.mxu2 %v692_v24  ;;  %2130 = vmatpush.bf16.xpose.msra.mxu3 %v692_v24 }
  0xfa   : > { %718 = vmatpush.bf16.xpose.msra.mxu0 %v692_v24  ;;  %2128 = vmatpush.bf16.xpose.msra.mxu1 %v692_v24 }
  0xfc   : > { %891 = vperm.xlu2 %2178, %v841_v11   ;;  %v1236_v11 = vld [vmem:[%s2358_s27 + $0x50] sm:$0xff] }
 0x100   : > { %896 = vperm.xlu0 %2179, %v842_v13   ;;  %v1247_v13 = vld [vmem:[%s2363_s14 + $0x28] sm:$0xff] }
 0x101   : > { %2132 = vmatpush.bf16.xpose.msra.mxu2 %v689_v28  ;;  %2133 = vmatpush.bf16.xpose.msra.mxu3 %v689_v28 }
 0x102   : > { %719 = vmatpush.bf16.xpose.msra.mxu0 %v689_v28  ;;  %2131 = vmatpush.bf16.xpose.msra.mxu1 %v689_v28  ;;  %v1241_v28 = vld [vmem:[%s2358_s27 + $0x78] sm:$0xff] }
 0x104   : > { %901 = vperm.xlu2 %2178, %v843_v15   ;;  %v1238_v15 = vld [vmem:[%s2358_s27 + $0x60] sm:$0xff] }
 0x108   : > { %916 = vperm.xlu0 %2179, %v846_v17   ;;  %2047 = vmatmul.msk.bf16.vlgmr.msra.gmra.mxu2 %vm663_vm2, %v2059_v30  ;;  %v1248_v17 = vld [vmem:[%s2363_s14 + $0x30] sm:$0xff] }
 0x109   : > { %2049 = vmatmul.msk.bf16.vlgmr.msra.gmra.mxu3 %vm663_vm2, %v2061_v31  ;;  %2043 = vmatmul.msk.bf16.vlgmr.msra.gmra.mxu0 %vm663_vm2, %v2055_v34 }
 0x10a   : > { %2045 = vmatmul.msk.bf16.vlgmr.msra.gmra.mxu1 %vm663_vm2, %v2057_v35  ;;  %v1253_v35 = vld [vmem:[%s2363_s14 + $0x58] sm:$0xff] }
 0x10c   : > { %906 = vperm.xlu2 %2178, %v844_v19   ;;  %v1239_v19 = vld [vmem:[%s2358_s27 + $0x68] sm:$0xff] }
 0x110   : > { %926 = vperm.xlu0 %2179, %v848_v21  }
 0x114   : > { %911 = vperm.xlu2 %2178, %v845_v22  }
 0x118   : > { %936 = vperm.xlu0 %2179, %v850_v25   ;;  %2048 = vmatmul.msk.bf16.gmra.mxu2 %vm663_vm2, %v2060_v39  ;;  %v1250_v25 = vld [vmem:[%s2363_s14 + $0x40] sm:$0xff] }
 0x119   : > { %2050 = vmatmul.msk.bf16.gmra.mxu3 %vm663_vm2, %v2062_v40  ;;  %2044 = vmatmul.msk.bf16.gmra.mxu0 %vm663_vm2, %v2056_v44  ;;  %v1254_v39 = vld [vmem:[%s2363_s14 + $0x60] sm:$0xff] }
 0x11a   : > { %2046 = vmatmul.msk.bf16.gmra.mxu1 %vm663_vm2, %v2058_v45 }
 0x11c   : > { %921 = vperm.xlu2 %2178, %v847_v26  }
 0x120   : > { %946 = vperm.xlu0 %2179, %v852_v29   ;;  %v1251_v29 = vld [vmem:[%s2363_s14 + $0x48] sm:$0xff] }
 0x124   : > { %931 = vperm.xlu2 %2178, %v849_v32   ;;  %v1252_v32 = vld [vmem:[%s2363_s14 + $0x50] sm:$0xff] }
 0x128   : > { %956 = vperm.xlu0 %2179, %v854_v33  }
 0x12c   : > { %941 = vperm.xlu2 %2178, %v851_v36  }
 0x130   : > { %966 = vperm.xlu0 %2179, %v856_v37  }
 0x134   : > { %951 = vperm.xlu2 %2178, %v853_v41  }
 0x137   : > { %v795_v43 = vpop.xlane.xlu0 %794  ;;  %v807_v55 = vpop.xlane.xlu2 %806 }
 0x138   : > { %1292 = vperm.xlu0 %2179, %v1226_v42   ;;  %857 = vxpose.xlu1.b32.start [1/16] (narrow) %v795_v43, 8  ;;  %v801_v49 = vpop.xlane.xlu1 %800  ;;  %v1255_v42 = vld [vmem:[%s2363_s14 + $0x68] sm:$0xff] }
 0x13c   : > { %961 = vperm.xlu2 %2178, %v855_v46   ;;  %v1256_v46 = vld [vmem:[%s2363_s14 + $0x70] sm:$0xff] }
 0x13f   : > { %v798_v48 = vpop.xlane.xlu0 %797  ;;  %v810_v59 = vpop.xlane.xlu2 %809 }
 0x140   : > { %1297 = vperm.xlu0 %2179, %v1227_v47   ;;  %858 = vxpose.xlu1.b32.cont [2/16] (narrow) %v798_v48, 8  ;;  %v804_v52 = vpop.xlane.xlu1 %803 }
 0x147   : > { %v813_v51 = vpop.xlane.xlu0 %812  ;;  %v819_v5 = vpop.xlane.xlu2 %818 }
 0x148   : > { %1302 = vperm.xlu0 %2179, %v1228_v50   ;;  %859 = vxpose.xlu1.b32.cont [3/16] (narrow) %v801_v49, 8  ;;  %v816_v1 = vpop.xlane.xlu1 %815 }
 0x14f   : > { %v822_v54 = vpop.xlane.xlu0 %821  ;;  %v828_v16 = vpop.xlane.xlu2 %827 }
 0x150   : > { %1307 = vperm.xlu0 %2179, %v1229_v53   ;;  %860 = vxpose.xlu1.b32.cont [4/16] (narrow) %v804_v52, 8  ;;  %v825_v12 = vpop.xlane.xlu1 %824 }
 0x157   : > { %v831_v58 = vpop.xlane.xlu0 %830  ;;  %v837_v21 = vpop.xlane.xlu2 %836 }
 0x158   : > { %1312 = vperm.xlu0 %2179, %v1230_v56   ;;  %861 = vxpose.xlu1.b32.cont [5/16] (narrow) %v807_v55, 8  ;;  %v834_v24 = vpop.xlane.xlu1 %833 }
 0x15f   : > { %v840_v63 = vpop.xlane.xlu0 %839  ;;  %v892_v26 = vpop.permute.xlu2 %891 }
 0x160   : > { %1317 = vperm.xlu0 %2179, %v1231_v57   ;;  %862 = vxpose.xlu1.b32.cont [6/16] (narrow) %v810_v59, 8 }
 0x162   : > { %1258 = vxpose.xlu2.b32.start [1/16] (narrow) %v1242_v60, 8 }
 0x167   : > { %v902_v31 = vpop.permute.xlu2 %901 }
 0x168   : > { %1322 = vperm.xlu0 %2179, %v1232_v61   ;;  %863 = vxpose.xlu1.b32.cont [7/16] (narrow) %v813_v51, 8  ;;  %v1257_v51 = vld [vmem:[%s2363_s14 + $0x78] sm:$0xff] }
 0x16a   : > { %1259 = vxpose.xlu2.b32.cont [2/16] (narrow) %v1243_v62, 8 }
 0x16f   : > { %v907_v34 = vpop.permute.xlu2 %906 }
 0x170   : > { %1327 = vperm.xlu0 %2179, %v1233_v0   ;;  %864 = vxpose.xlu1.b32.cont [8/16] (narrow) %v816_v1, 8 }
 0x172   : > { %1260 = vxpose.xlu2.b32.cont [3/16] (narrow) %v1244_v2, 8  ;;  %v2523_v3 = vpop.permute.xlu0 %896 }
 0x177   : > { %v2558_v40 = vpop.permute.xlu2 %911 }
 0x178   : > { %1332 = vperm.xlu0 %2179, %v1234_v4   ;;  %865 = vxpose.xlu1.b32.cont [9/16] (narrow) %v819_v5, 8 }
 0x17a   : > { %1261 = vxpose.xlu2.b32.cont [4/16] (narrow) %v1245_v6, 8  ;;  %v2527_v7 = vpop.permute.xlu0 %916 }
 0x17f   : > { %v922_v44 = vpop.permute.xlu2 %921 }
 0x180   : > { %1337 = vperm.xlu0 %2179, %v1235_v8   ;;  %866 = vxpose.xlu1.b32.cont [10/16] (narrow) %v822_v54, 8 }
 0x182   : > { %1262 = vxpose.xlu2.b32.cont [5/16] (narrow) %v1246_v9, 8  ;;  %v2531_v10 = vpop.permute.xlu0 %926 }
 0x186   : > { %v721_v37 = vpop.f32.mrf.mxu0 }
 0x187   : > { %v2570_v49 = vpop.permute.xlu2 %931  ;;  %v2572_v50 = vpop.f32.mrf.mxu1  ;;  %v986_v57 = vmul.f32 2.0, %v721_v37 }
 0x188   : > { %1342 = vperm.xlu0 %2179, %v1236_v11   ;;  %867 = vxpose.xlu1.b32.cont [11/16] (narrow) %v825_v12, 8 }
 0x18a   : > { %1263 = vxpose.xlu2.b32.cont [6/16] (narrow) %v1247_v13, 8  ;;  %v2535_v14 = vpop.permute.xlu0 %936 }
 0x18e   : > { %v2563_v43 = vpop.f32.mrf.mxu0 }
 0x18f   : > { %v2579_v56 = vpop.permute.xlu2 %941 }
 0x190   : > { %1352 = vperm.xlu0 %2179, %v1238_v15   ;;  %868 = vxpose.xlu1.b32.cont [12/16] (narrow) %v828_v16, 8 }
 0x192   : > { %1264 = vxpose.xlu2.b32.cont [7/16] (narrow) %v1248_v17, 8  ;;  %v2539_v18 = vpop.permute.xlu0 %946 }
 0x196   : > { %v726_v47 = vpop.f32.mrf.mxu0 }
 0x197   : > { %v988_v59 = vmul.f32 2.0, %v726_v47  ;;  %v2599_v13 = vpop.permute.xlu2 %951  ;;  %v2623_v47 = vpop.f32.mrf.mxu3 }
 0x198   : > { %1357 = vperm.xlu0 %2179, %v1239_v19   ;;  %869 = vxpose.xlu1.b32.cont [13/16] (narrow) %v831_v58, 8  ;;  %v733_v58 = vpop.f32.mrf.mxu1 }
 0x199   : > { %v991_v11 = vmul.f32 2.0, %v733_v58 }
 0x19a   : > { %1265 = vxpose.xlu2.b32.cont [8/16] (narrow) %v1249_v20, 8  ;;  %v2543_v22 = vpop.permute.xlu0 %956 }
 0x19e   : > { %v728_v53 = vpop.f32.mrf.mxu0 }
 0x19f   : > { %v989_v60 = vmul.f32 2.0, %v728_v53 }
 0x1a0   : > { %1362 = vperm.xlu0 %2179, %v1240_v23   ;;  %870 = vxpose.xlu1.b32.cont [14/16] (narrow) %v834_v24, 8  ;;  %v736_v15 = vpop.f32.mrf.mxu1 }
 0x1a1   : > { %v992_v16 = vmul.f32 2.0, %v736_v15 }
 0x1a2   : > { %1266 = vxpose.xlu2.b32.cont [9/16] (narrow) %v1250_v25, 8  ;;  %v967_v27 = vpop.permute.xlu0 %966 }
 0x1a8   : > { %1367 = vperm.xlu0 %2179, %v1241_v28   ;;  %871 = vxpose.xlu1.b32.cont [15/16] (narrow) %v837_v21, 8  ;;  %v738_v37 = vpop.f32.mrf.mxu1 }
 0x1aa   : > { %1267 = vxpose.xlu2.b32.cont [10/16] (narrow) %v1251_v29, 8  ;;  %v2549_v30 = vpop.permute.xlu0 %1292 }
 0x1b0   : > { %872 = vxpose.xlu1.b32.end [16/16] (narrow) %v840_v63, 8 }
 0x1b2   : > { %1268 = vxpose.xlu2.b32.cont [11/16] (narrow) %v1252_v32, 8  ;;  %v2552_v33 = vpop.permute.xlu0 %1297 }
 0x1ba   : > { %1269 = vxpose.xlu2.b32.cont [12/16] (narrow) %v1253_v35, 8  ;;  %v2555_v36 = vpop.permute.xlu0 %1302  ;;  %v2616_v35 = vpop.permute.xlu2 %961 }
 0x1c2   : > { %1270 = vxpose.xlu2.b32.cont [13/16] (narrow) %v1254_v39, 8  ;;  %v2560_v41 = vpop.permute.xlu0 %1307 }
 0x1ca   : > { %1271 = vxpose.xlu2.b32.cont [14/16] (narrow) %v1255_v42, 8  ;;  %v2565_v45 = vpop.permute.xlu0 %1312 }
 0x1d2   : > { %1272 = vxpose.xlu2.b32.cont [15/16] (narrow) %v1256_v46, 8  ;;  %v2568_v48 = vpop.permute.xlu0 %1317 }
 0x1da   : > { %1273 = vxpose.xlu2.b32.end [16/16] (narrow) %v1257_v51, 8  ;;  %v2575_v52 = vpop.permute.xlu0 %1322  ;;  %v1390_v51 = vstv %s2051_s24 }
 0x1dc   : > { %v873_v54 = vpop.trf.xlu1 }
 0x1dd   : > { %v2577_v55 = vperm.slane %v873_v54, 0  ;;  %v741_v54 = vpop.f32.mrf.mxu2 }
 0x1df   : > { %v973_v61 = vadd.f32 %v2577_v55, %v907_v34  ;;  %v2583_v62 = vadd.f32 %v2577_v55, %v967_v27  ;;  %v970_v63 = vadd.f32 %v2577_v55, %v892_v26  ;;  %v972_v0 = vadd.f32 %v2577_v55, %v902_v31 }
 0x1e0   : > { %v975_v12 = vadd.f32 %v2577_v55, %v2527_v7  ;;  %v976_v17 = vadd.f32 %v2577_v55, %v922_v44  ;;  %v1388_v27 = vlaneseq  ;;  %v977_v58 = vadd.f32 %v2577_v55, %v2531_v10  ;;  %v1595_v10 = vld [vmem:[#allocation3 + $0x38] sm:$0xff] }
 0x1e1   : > { %v1005_v1 = vsub.f32 %v973_v61, %v989_v60  ;;  %v1002_v4 = vsub.f32 %v970_v63, %v986_v57  ;;  %v1004_v5 = vsub.f32 %v972_v0, %v988_v59  ;;  %v993_v59 = vmul.f32 2.0, %v738_v37 }
 0x1e2   : > { %v2587_v2 = vpop.permute.xlu0 %1327  ;;  %v1007_v20 = vsub.f32 %v975_v12, %v991_v11  ;;  %v1008_v25 = vsub.f32 %v976_v17, %v992_v16  ;;  %v1389_v44 = vand.u32 127, %v1388_v27  ;;  %v994_v60 = vmul.f32 2.0, %v741_v54  ;;  %v2650_v27 = vpop.f32.mrf.mxu3 }
 0x1e3   : > { %v2589_v6 = vmax.f32 %v1002_v4, 1e-12  ;;  %v2591_v8 = vmax.f32 %v1004_v5, 1e-12  ;;  %v2593_v9 = vmax.f32 %v1005_v1, 1e-12  ;;  %v978_v0 = vadd.f32 %v2577_v55, %v2570_v49 }
 0x1e4   : > { %v2607_v28 = vmax.f32 %v1007_v20, 1e-12  ;;  %v2614_v34 = vmax.f32 %v1008_v25, 1e-12  ;;  %v1391_v61 = vadd.s32 %v1390_v51, %v1389_v44  ;;  %v1393_v4 = vstv %s2611_s20 }
 0x1e5   : > { %2181 = vrsqrt.f32 %v2589_v6  ;;  %v1009_v12 = vsub.f32 %v977_v58, %v993_v59  ;;  %vm1041_vm3 = vcmp.eq.f32.partialorder %v2589_v6, inf  ;;  %v1010_v20 = vsub.f32 %v978_v0, %v994_v60  ;;  %v743_v37 = vpop.f32.mrf.mxu2 }
 0x1e6   : > { %2183 = vrsqrt.f32 %v2591_v8  ;;  %vm2638_vm4 = vcmp.lt.s32.totalorder %v1391_v61, %v1393_v4  ;;  %vm1043_vm5 = vcmp.eq.f32.partialorder %v2589_v6, 0.0  ;;  %v987_v54 = vmul.f32 2.0, %v2563_v43  ;;  %v1237_v4 = vld [vmem:[%s2358_s27 + $0x58] sm:$0xff] }
 0x1e7   : > { %2185 = vrsqrt.f32 %v2593_v9  ;;  %v2667_v44 = vmax.f32 %v1010_v20, 1e-12  ;;  %vm1065_vm9 = vcmp.eq.f32.partialorder %v2591_v8, inf  ;;  %v1068_v61 = vand.u32 2147483648, %v2591_v8 }
 0x1e8   : > { %2187 = vrsqrt.f32 %v2607_v28  ;;  %vm1067_vm11 = vcmp.eq.f32.partialorder %v2591_v8, 0.0  ;;  %v995_v0 = vmul.f32 2.0, %v743_v37  ;;  %vm1077_vm13 = vcmp.eq.f32.partialorder %v2593_v9, inf }
 0x1e9   : > { %2189 = vrsqrt.f32 %v2614_v34  ;;  %vm1079_vm15 = vcmp.eq.f32.partialorder %v2593_v9, 0.0 }
 0x1ea   : > { %v2602_v19 = vpop.permute.xlu0 %1332 }
 0x1eb   : > { %v2182_v21 = vpop.eup %2181 }
 0x1ec   : > { %v2184_v23 = vpop.eup %2183  ;;  %v1035_v24 = vmul.f32 %v2182_v21, %v2589_v6 }
 0x1ed   : > { %v1059_v26 = vmul.f32 %v2184_v23, %v2591_v8  ;;  %v2609_v29 = vpop.eup %2185 }
 0x1ee   : > { %v1036_v7 = vmul.f32 %v2182_v21, %v1035_v24  ;;  %v1071_v46 = vmul.f32 %v2609_v29, %v2593_v9  ;;  %v2633_v11 = vpop.eup %2187 }
 0x1ef   : > { %v1060_v31 = vmul.f32 %v2184_v23, %v1059_v26  ;;  %v2635_v15 = vpop.eup %2189  ;;  %v1095_v25 = vmul.f32 %v2633_v11, %v2607_v28 }
 0x1f0   : > { %v1037_v32 = vmul.f32 0.5, %v1036_v7  ;;  %v1072_v63 = vmul.f32 %v2609_v29, %v1071_v46  ;;  %v1044_v7 = vand.u32 2147483648, %v2589_v6 }
 0x1f1   : > { %v1061_v53 = vmul.f32 0.5, %v1060_v31  ;;  %v2652_v31 = vmax.f32 %v1009_v12, 1e-12  ;;  %v979_v12 = vadd.f32 %v2577_v55, %v2535_v14 }
 0x1f2   : > { %v2618_v39 = vpop.permute.xlu0 %1337  ;;  %v1038_v42 = vsub.f32 1.5, %v1037_v32  ;;  %v1073_v17 = vmul.f32 0.5, %v1072_v63  ;;  %v1107_v32 = vmul.f32 %v2635_v15, %v2614_v34 }
 0x1f3   : > { %v1062_v5 = vsub.f32 1.5, %v1061_v53  ;;  %2191 = vrsqrt.f32 %v2652_v31 }
 0x1f4   : > { %v1039_v57 = vmul.f32 %v2182_v21, %v1038_v42  ;;  %v1074_v53 = vsub.f32 1.5, %v1073_v17  ;;  %2193 = vrsqrt.f32 %v2667_v44  ;;  %v756_v17 = vpop.f32.mrf.mxu3 }
 0x1f5   : > { %v1063_v24 = vmul.f32 %v2184_v23, %v1062_v5  ;;  %v990_v23 = vmul.f32 2.0, %v2572_v50  ;;  %v1096_v50 = vmul.f32 %v2633_v11, %v1095_v25  ;;  %v746_v25 = vpop.f32.mrf.mxu2 }
 0x1f6   : > { %v1040_v1 = vmul.f32 %v1039_v57, %v2589_v6  ;;  %v1108_v57 = vmul.f32 %v2635_v15, %v1107_v32  ;;  %v1075_v43 = vmul.f32 %v2609_v29, %v1074_v53  ;;  %v984_v32 = vadd.f32 %v2577_v55, %v2616_v35 }
 0x1f7   : > { %v1064_v51 = vmul.f32 %v1063_v24, %v2591_v8  ;;  %v1097_v60 = vmul.f32 0.5, %v1096_v50  ;;  %v996_v14 = vmul.f32 2.0, %v746_v25  ;;  %v1080_v50 = vand.u32 2147483648, %v2593_v9 }
 0x1f8   : > { %v1042_v49 = vsel %vm1041_vm3, %v2589_v6, %v1040_v1  ;;  %v974_v6 = vadd.f32 %v2577_v55, %v2558_v40  ;;  %v971_v40 = vadd.f32 %v2577_v55, %v2523_v3  ;;  %v1076_v20 = vmul.f32 %v1075_v43, %v2593_v9 }
 0x1f9   : > { %v2660_v42 = vsel %vm1043_vm5, %v1044_v7, %v1042_v49  ;;  %v1066_v59 = vsel %vm1065_vm9, %v2591_v8, %v1064_v51  ;;  %v1098_v49 = vsub.f32 1.5, %v1097_v60  ;;  %v1000_v7 = vmul.f32 2.0, %v756_v17 }
 0x1fa   : > { %v2647_v26 = vpop.permute.xlu0 %1342  ;;  %v1006_v58 = vsub.f32 %v974_v6, %v990_v23  ;;  %v1003_v63 = vsub.f32 %v971_v40, %v987_v54  ;;  %v2699_v1 = vsel %vm1067_vm11, %v1068_v61, %v1066_v59  ;;  %v980_v6 = vadd.f32 %v2577_v55, %v2579_v56 }
 0x1fb   : > { %v1274_v16 = vpop.trf.xlu2  ;;  %v1011_v51 = vsub.f32 %v979_v12, %v995_v0  ;;  %v1078_v35 = vsel %vm1077_vm13, %v2593_v9, %v1076_v20  ;;  %v1099_v53 = vmul.f32 %v2633_v11, %v1098_v49  ;;  %v982_v17 = vadd.f32 %v2577_v55, %v2599_v13 }
 0x1fc   : > { %v2642_v21 = vperm.slane %v1274_v16, 0  ;;  %v2702_v5 = vmax.f32 %v1006_v58, 1e-12  ;;  %v2706_v16 = vpop.eup %2191  ;;  %v2712_v24 = vmax.f32 %v1003_v63, 1e-12  ;;  %v1012_v40 = vsub.f32 %v980_v6, %v996_v14 }
 0x1fd   : > { %v2716_v23 = vpop.eup %2193  ;;  %v2743_v58 = vsel %vm1079_vm15, %v1080_v50, %v1078_v35  ;;  %v2746_v43 = vmax.f32 %v1011_v51, 1e-12  ;;  %vm1101_vm5 = vcmp.eq.f32.partialorder %v2607_v28, inf  ;;  %v1104_v13 = vand.u32 2147483648, %v2607_v28 }
 0x1fe   : > { %vm1371_vm6 = vcmp.eq.f32.partialorder %v2549_v30, %v2642_v21  ;;  %vm1373_vm8 = vcmp.eq.f32.partialorder %v2555_v36, %v2642_v21  ;;  %vm1374_vm12 = vcmp.eq.f32.partialorder %v2560_v41, %v2642_v21  ;;  %2195 = vrsqrt.f32 %v2702_v5 }
 0x1ff   : > { %vm1395_vm7 = vmand %vm1371_vm6, %vm2638_vm4  ;;  %2197 = vrsqrt.f32 %v2712_v24  ;;  %v1131_v54 = vmul.f32 %v2716_v23, %v2667_v44  ;;  %vm1376_vm3 = vcmp.eq.f32.partialorder %v2568_v48, %v2642_v21  ;;  %v2776_v12 = vmax.f32 %v1012_v40, 1e-12 }
 0x200   : > { %v1411_v46 = vsel %vm1395_vm7, %v2660_v42, -inf  ;;  %vm2692_vm10 = vmand %vm1373_vm8, %vm2638_vm4  ;;  %vm1103_vm7 = vcmp.eq.f32.partialorder %v2607_v28, 0.0  ;;  %vm1115_vm13 = vcmp.eq.f32.partialorder %v2614_v34, 0.0 }
 0x201   : > { %1427 = vmax.xlane.f32.xlu0 %v1411_v46  ;;  %v1413_v8 = vsel %vm2692_vm10, %v2699_v1, -inf  ;;  %v1119_v46 = vmul.f32 %v2706_v16, %v2652_v31  ;;  %vm2735_vm14 = vmand %vm1374_vm12, %vm2638_vm4  ;;  %v1132_v63 = vmul.f32 %v2716_v23, %v1131_v54  ;;  %vm1113_vm10 = vcmp.eq.f32.partialorder %v2614_v34, inf }
 0x202   : > { %v2697_v29 = vpop.permute.xlu0 %1352  ;;  %vm2754_vm1 = vmxor %vm1371_vm6, %vm2256_vm0  ;;  %v1414_v9 = vsel %vm2735_vm14, %v2743_v58, -inf }
 0x203   : > { %2180 = vset.pattern.permute.xlu1 %v2255_v38  ;;  %v1109_v38 = vmul.f32 0.5, %v1108_v57  ;;  %v1016_v57 = vsub.f32 %v984_v32, %v1000_v7  ;;  %v1120_v59 = vmul.f32 %v2706_v16, %v1119_v46  ;;  %vm1475_vm2 = vmand %vm2754_vm1, %vm2638_vm4  ;;  %v1133_v36 = vmul.f32 0.5, %v1132_v63 }
 0x204   : > { %v2766_v3 = vpop.eup %2195  ;;  %vm1461_vm6 = vmxor %vm1373_vm8, %vm2256_vm0  ;;  %vm1377_vm8 = vcmp.eq.f32.partialorder %v2575_v52, %v2642_v21  ;;  %v1116_v46 = vand.u32 2147483648, %v2614_v34  ;;  %vm1378_vm1 = vcmp.eq.f32.partialorder %v2587_v2, %v2642_v21 }
 0x205   : > { %v1110_v37 = vsub.f32 1.5, %v1109_v38  ;;  %v2748_v60 = vmax.f32 %v1016_v57, 1e-12  ;;  %v998_v38 = vmul.f32 2.0, %v2623_v47  ;;  %v2198_v0 = vpop.eup %2197  ;;  %v2781_v47 = vsel %vm1475_vm2, %v2660_v42, inf  ;;  %vm2798_vm9 = vmand %vm1376_vm3, %vm2638_vm4 }
 0x206   : > { %v1047_v20 = vmul.f32 %v2198_v0, %v2712_v24  ;;  %v1083_v25 = vmul.f32 %v2766_v3, %v2702_v5  ;;  %vm1477_vm11 = vmand %vm1461_vm6, %vm2638_vm4  ;;  %v1134_v54 = vsub.f32 1.5, %v1133_v36 }
 0x207   : > { %v1111_v11 = vmul.f32 %v2635_v15, %v1110_v37  ;;  %v1100_v15 = vmul.f32 %v1099_v53, %v2607_v28  ;;  %2199 = vrsqrt.f32 %v2748_v60  ;;  %v1014_v32 = vsub.f32 %v982_v17, %v998_v38  ;;  %vm1465_vm14 = vmxor %vm1377_vm8, %vm2256_vm0 }
 0x208   : > { %2201 = vrsqrt.f32 %v2746_v43  ;;  %v1048_v7 = vmul.f32 %v2198_v0, %v1047_v20  ;;  %v2812_v14 = vsel %vm1477_vm11, %v2699_v1, inf  ;;  %v1084_v57 = vmul.f32 %v2766_v3, %v1083_v25  ;;  %vm1481_vm15 = vmand %vm1465_vm14, %vm2638_vm4 }
 0x209   : > { %1431 = vmax.xlane.f32.xlu0 %v1413_v8  ;;  %v1121_v8 = vmul.f32 0.5, %v1120_v59  ;;  %v1102_v49 = vsel %vm1101_vm5, %v2607_v28, %v1100_v15  ;;  %2203 = vrsqrt.f32 %v2776_v12  ;;  %v2831_v40 = vmax.f32 %v1014_v32, 1e-12  ;;  %vm2849_vm2 = vmand %vm1377_vm8, %vm2638_vm4 }
 0x20a   : > { %1347 = vperm.xlu1 %2180, %v1237_v4   ;;  %v2769_v30 = vpop.permute.xlu0 %1357  ;;  %v1112_v4 = vmul.f32 %v1111_v11, %v2614_v34  ;;  %v2814_v6 = vsel %vm1103_vm7, %v1104_v13, %v1102_v49  ;;  %v1049_v35 = vmul.f32 0.5, %v1048_v7  ;;  %vm1372_vm5 = vcmp.eq.f32.partialorder %v2552_v33, %v2642_v21 }
 0x20b   : > { %v1122_v51 = vsub.f32 1.5, %v1121_v8  ;;  %v1416_v53 = vsel %vm2798_vm9, %v2814_v6, -inf  ;;  %2205 = vrsqrt.f32 %v2831_v40  ;;  %vm1053_vm7 = vcmp.eq.f32.partialorder %v2712_v24, inf  ;;  %vm2867_vm9 = vmand %vm1378_vm1, %vm2638_vm4 }
 0x20c   : > { %v1114_v28 = vsel %vm1113_vm10, %v2614_v34, %v1112_v4  ;;  %v1050_v11 = vsub.f32 1.5, %v1049_v35  ;;  %v1056_v25 = vand.u32 2147483648, %v2712_v24  ;;  %vm1460_vm10 = vmxor %vm1372_vm5, %vm2256_vm0  ;;  %vm1055_vm11 = vcmp.eq.f32.partialorder %v2712_v24, 0.0 }
 0x20d   : > { %v2200_v37 = vpop.eup %2199  ;;  %v1117_v56 = vsel %vm1115_vm13, %v1116_v46, %v1114_v28  ;;  %vm1125_vm13 = vcmp.eq.f32.partialorder %v2652_v31, inf  ;;  %vm1476_vm14 = vmand %vm1460_vm10, %vm2638_vm4  ;;  %vm1379_vm10 = vcmp.eq.f32.partialorder %v2602_v19, %v2642_v21  ;;  %v1212_v48 = vand.u32 2147483648, %v2748_v60 }
 0x20e   : > { %v1203_v50 = vmul.f32 %v2200_v37, %v2748_v60  ;;  %v2826_v1 = vpop.eup %2201  ;;  %v2833_v59 = vsel %vm1481_vm15, %v1117_v56, inf  ;;  %v1051_v15 = vmul.f32 %v2198_v0, %v1050_v11  ;;  %v1085_v0 = vmul.f32 0.5, %v1084_v57 }
 0x20f   : > { %v2838_v38 = vpop.eup %2203  ;;  %v1143_v63 = vmul.f32 %v2826_v1, %v2746_v43  ;;  %v1417_v42 = vsel %vm2849_vm2, %v1117_v56, -inf  ;;  %vm1127_vm15 = vcmp.eq.f32.partialorder %v2652_v31, 0.0  ;;  %vm1462_vm2 = vmxor %vm1374_vm12, %vm2256_vm0  ;;  %v1128_v56 = vand.u32 2147483648, %v2652_v31 }
 0x210   : > { %v1204_v34 = vmul.f32 %v2200_v37, %v1203_v50  ;;  %v1052_v8 = vmul.f32 %v1051_v15, %v2712_v24  ;;  %v1155_v49 = vmul.f32 %v2838_v38, %v2776_v12  ;;  %vm1464_vm12 = vmxor %vm1376_vm3, %vm2256_vm0 }
 0x211   : > { %1433 = vmax.xlane.f32.xlu0 %v1414_v9  ;;  %v1123_v9 = vmul.f32 %v2706_v16, %v1122_v51  ;;  %v1135_v16 = vmul.f32 %v2716_v23, %v1134_v54  ;;  %v1144_v36 = vmul.f32 %v2826_v1, %v1143_v63  ;;  %vm1467_vm3 = vmxor %vm1379_vm10, %vm2256_vm0 }
 0x212   : > { %v2835_v61 = vpop.permute.xlu0 %1362  ;;  %v1205_v4 = vmul.f32 0.5, %v1204_v34  ;;  %v1054_v13 = vsel %vm1053_vm7, %v2712_v24, %v1052_v8  ;;  %v2908_v24 = vpop.eup %2205  ;;  %vm1137_vm7 = vcmp.eq.f32.partialorder %v2667_v44, inf  ;;  %v1140_v34 = vand.u32 2147483648, %v2667_v44 }
 0x213   : > { %vm1385_vm6 = vcmp.eq.f32.partialorder %v2835_v61, %v2642_v21  ;;  %v1124_v20 = vmul.f32 %v1123_v9, %v2652_v31  ;;  %v1136_v32 = vmul.f32 %v1135_v16, %v2667_v44  ;;  %v2893_v46 = vsel %vm1055_vm11, %v1056_v25, %v1054_v13  ;;  %vm1478_vm11 = vmand %vm1462_vm2, %vm2638_vm4  ;;  %v758_v61 = vpop.f32.mrf.mxu3 }
 0x214   : > { %v1206_v52 = vsub.f32 1.5, %v1205_v4  ;;  %vm2886_vm8 = vmxor %vm1385_vm6, %vm2256_vm0  ;;  %v2902_v50 = vsel %vm1476_vm14, %v2893_v46, inf  ;;  %v1145_v54 = vmul.f32 0.5, %v1144_v36  ;;  %vm1209_vm14 = vcmp.eq.f32.partialorder %v2748_v60, inf }
 0x215   : > { %v1126_v35 = vsel %vm1125_vm13, %v2652_v31, %v1124_v20  ;;  %v1138_v57 = vsel %vm1137_vm7, %v2667_v44, %v1136_v32  ;;  %vm1139_vm13 = vcmp.eq.f32.partialorder %v2667_v44, 0.0  ;;  %v2920_v41 = vsel %vm1478_vm11, %v2743_v58, inf  ;;  %vm1480_vm2 = vmand %vm1464_vm12, %vm2638_vm4 }
 0x216   : > { %v1207_v7 = vmul.f32 %v2200_v37, %v1206_v52  ;;  %v1086_v37 = vsub.f32 1.5, %v1085_v0  ;;  %v2928_v11 = vsel %vm1127_vm15, %v1128_v56, %v1126_v35  ;;  %v1179_v63 = vmul.f32 %v2908_v24, %v2831_v40  ;;  %vm1483_vm7 = vmand %vm1467_vm3, %vm2638_vm4 }
 0x217   : > { %v2939_v4 = vsel %vm1480_vm2, %v2814_v6, inf  ;;  %v1418_v31 = vsel %vm2867_vm9, %v2928_v11, -inf  ;;  %v1141_v44 = vsel %vm1139_vm13, %v1140_v34, %v1138_v57  ;;  %vm1211_vm15 = vcmp.eq.f32.partialorder %v2748_v60, 0.0  ;;  %vm1489_vm11 = vmand %vm2886_vm8, %vm2638_vm4 }
 0x218   : > { %v1208_v51 = vmul.f32 %v1207_v7, %v2748_v60  ;;  %v1087_v9 = vmul.f32 %v2766_v3, %v1086_v37  ;;  %v1146_v3 = vsub.f32 1.5, %v1145_v54  ;;  %v2953_v6 = vsel %vm1483_vm7, %v1141_v44, inf  ;;  %vm1403_vm9 = vmand %vm1379_vm10, %vm2638_vm4 }
 0x219   : > { %1437 = vmax.xlane.f32.xlu0 %v1416_v53  ;;  %v1156_v53 = vmul.f32 %v2838_v38, %v1155_v49  ;;  %vm1375_vm13 = vcmp.eq.f32.partialorder %v2565_v45, %v2642_v21  ;;  %vm1089_vm8 = vcmp.eq.f32.partialorder %v2702_v5, inf  ;;  %v1419_v13 = vsel %vm1403_vm9, %v1141_v44, -inf }
 0x21a   : > { %v1210_v15 = vsel %vm1209_vm14, %v2748_v60, %v1208_v51  ;;  %v1088_v0 = vmul.f32 %v1087_v9, %v2702_v5  ;;  %v1180_v60 = vmul.f32 %v2908_v24, %v1179_v63  ;;  %v1147_v52 = vmul.f32 %v2826_v1, %v1146_v3  ;;  %vm1399_vm14 = vmand %vm1375_vm13, %vm2638_vm4 }
 0x21b   : > { %v1157_v58 = vmul.f32 0.5, %v1156_v53  ;;  %v2951_v17 = vsel %vm1211_vm15, %v1212_v48, %v1210_v15  ;;  %v999_v1 = vmul.f32 2.0, %v2650_v27  ;;  %vm1091_vm10 = vcmp.eq.f32.partialorder %v2702_v5, 0.0 }
 0x21c   : > { %v2960_v16 = vsel %vm1489_vm11, %v2951_v17, inf  ;;  %v1090_v20 = vsel %vm1089_vm8, %v2702_v5, %v1088_v0  ;;  %v1181_v49 = vmul.f32 0.5, %v1180_v60  ;;  %v1148_v19 = vmul.f32 %v1147_v52, %v2746_v43 }
 0x21d   : > { %v1158_v8 = vsub.f32 1.5, %v1157_v58  ;;  %vm1380_vm12 = vcmp.eq.f32.partialorder %v2618_v39, %v2642_v21  ;;  %vm1149_vm2 = vcmp.eq.f32.partialorder %v2746_v43, inf  ;;  %vm1381_vm15 = vcmp.eq.f32.partialorder %v2647_v26, %v2642_v21 }
 0x21e   : > { %v1182_v28 = vsub.f32 1.5, %v1181_v49  ;;  %v1150_v27 = vsel %vm1149_vm2, %v2746_v43, %v1148_v19  ;;  %vm1404_vm3 = vmand %vm1380_vm12, %vm2638_vm4  ;;  %vm1151_vm7 = vcmp.eq.f32.partialorder %v2746_v43, 0.0  ;;  %vm1161_vm11 = vcmp.eq.f32.partialorder %v2776_v12, inf }
 0x21f   : > { %v1159_v23 = vmul.f32 %v2838_v38, %v1158_v8  ;;  %v983_v38 = vadd.f32 %v2577_v55, %v2543_v22  ;;  %v1164_v53 = vand.u32 2147483648, %v2776_v12  ;;  %vm1405_vm9 = vmand %vm1381_vm15, %vm2638_vm4  ;;  %vm1163_vm8 = vcmp.eq.f32.partialorder %v2776_v12, 0.0 }
 0x220   : > { %v1183_v51 = vmul.f32 %v2908_v24, %v1182_v28  ;;  %v1188_v34 = vand.u32 2147483648, %v2831_v40  ;;  %v981_v44 = vadd.f32 %v2577_v55, %v2539_v18 }
 0x221   : > { %1439 = vmax.xlane.f32.xlu0 %v1417_v42  ;;  %v1092_v42 = vand.u32 2147483648, %v2702_v5  ;;  %v1160_v7 = vmul.f32 %v1159_v23, %v2776_v12  ;;  %v1152_v5 = vand.u32 2147483648, %v2746_v43  ;;  %v1015_v22 = vsub.f32 %v983_v38, %v999_v1  ;;  %v1368_v1 = vpop.permute.xlu0 %1367 }
 0x222   : > { %v1184_v57 = vmul.f32 %v1183_v51, %v2831_v40 }
 0x223   : > { %v2986_v36 = vsel %vm1091_vm10, %v1092_v42, %v1090_v20  ;;  %v3004_v32 = vsel %vm1151_vm7, %v1152_v5, %v1150_v27  ;;  %v1162_v37 = vsel %vm1161_vm11, %v2776_v12, %v1160_v7  ;;  %v1031_v43 = vmax.f32 %v1015_v22, 1e-12  ;;  %vm1396_vm7 = vmand %vm1372_vm5, %vm2638_vm4  ;;  %v1539_v7 = vld [vmem:[#allocation2] sm:$0xff] }
 0x224   : > { %v1415_v25 = vsel %vm1399_vm14, %v2986_v36, -inf  ;;  %v1420_v35 = vsel %vm1404_vm3, %v3004_v32, -inf  ;;  %v1165_v56 = vsel %vm1163_vm8, %v1164_v53, %v1162_v37  ;;  %vm1383_vm14 = vcmp.eq.f32.partialorder %v2697_v29, %v2642_v21  ;;  %vm1409_vm11 = vmand %vm1385_vm6, %vm2638_vm4 }
 0x225   : > { %v1421_v54 = vsel %vm1405_vm9, %v1165_v56, -inf  ;;  %2207 = vrsqrt.f32 %v1031_v43  ;;  %vm1185_vm10 = vcmp.eq.f32.partialorder %v2831_v40, inf  ;;  %vm1407_vm2 = vmand %vm1383_vm14, %vm2638_vm4  ;;  %vm1187_vm3 = vcmp.eq.f32.partialorder %v2831_v40, 0.0 }
 0x226   : > { %v1186_v24 = vsel %vm1185_vm10, %v2831_v40, %v1184_v57  ;;  %v1412_v40 = vsel %vm1396_vm7, %v2893_v46, -inf  ;;  %v1425_v48 = vsel %vm1409_vm11, %v2951_v17, -inf  ;;  %vm1466_vm9 = vmxor %vm1378_vm1, %vm2256_vm0  ;;  %v1001_v46 = vmul.f32 2.0, %v758_v61 }
 0x227   : > { %v3028_v12 = vsel %vm1187_vm3, %v1188_v34, %v1186_v24  ;;  %vm1482_vm5 = vmand %vm1466_vm9, %vm2638_vm4  ;;  %vm1384_vm8 = vcmp.eq.f32.partialorder %v2769_v30, %v2642_v21  ;;  %vm1197_vm10 = vcmp.eq.f32.partialorder %v1031_v43, inf  ;;  %v1200_v26 = vand.u32 2147483648, %v1031_v43 }
 0x228   : > { %v1423_v15 = vsel %vm1407_vm2, %v3028_v12, -inf  ;;  %v1498_v0 = vsel %vm1482_vm5, %v2928_v11, inf  ;;  %vm1469_vm1 = vmxor %vm1381_vm15, %vm2256_vm0  ;;  %v1017_v18 = vsub.f32 %v2583_v62, %v1001_v46  ;;  %vm1199_vm7 = vcmp.eq.f32.partialorder %v1031_v43, 0.0  ;;  %v1545_v46 = vld [vmem:[#allocation2 + $0x30] sm:$0xff] }
 0x229   : > { %1441 = vmax.xlane.f32.xlu0 %v1418_v31  ;;  %v748_v31 = vpop.f32.mrf.mxu2  ;;  %vm1485_vm6 = vmand %vm1469_vm1, %vm2638_vm4  ;;  %vm1571_vm5 = vcmask 7168  }
 0x22a   : > { %v997_v3 = vmul.f32 2.0, %v748_v31  ;;  %v3064_v11 = vmax.f32 %v1017_v18, 1e-12  ;;  %v1501_v60 = vsel %vm1485_vm6, %v1165_v56, inf  ;;  %vm1472_vm15 = vmxor %vm1384_vm8, %vm2256_vm0  ;;  %vm1386_vm6 = vcmp.eq.f32.partialorder %v1368_v1, %v2642_v21 }
 0x22b   : > { %v2208_v9 = vpop.eup %2207  ;;  %vm1463_vm2 = vmxor %vm1375_vm13, %vm2256_vm0 }
 0x22c   : > { %v1191_v58 = vmul.f32 %v2208_v9, %v1031_v43  ;;  %v1013_v8 = vsub.f32 %v981_v44, %v997_v3  ;;  %vm1488_vm3 = vmand %vm1472_vm15, %vm2638_vm4 }
 0x22d   : > { %vm1479_vm11 = vmand %vm1463_vm2, %vm2638_vm4 }
 0x22e   : > { %v1192_v63 = vmul.f32 %v2208_v9, %v1191_v58  ;;  %v3058_v2 = vmax.f32 %v1013_v8, 1e-12  ;;  %v1495_v45 = vsel %vm1479_vm11, %v2986_v36, inf  ;;  %vm1468_vm13 = vmxor %vm1380_vm12, %vm2256_vm0  ;;  %v1542_v58 = vld [vmem:[#allocation2 + $0x18] sm:$0xff] }
 0x22f   : > { %vm1484_vm9 = vmand %vm1468_vm13, %vm2638_vm4  ;;  %vm1223_vm13 = vcmp.eq.f32.partialorder %v3064_v11, 0.0 }
 0x230   : > { %v1193_v33 = vmul.f32 0.5, %v1192_v63  ;;  %2209 = vrsqrt.f32 %v3058_v2  ;;  %v1500_v28 = vsel %vm1484_vm9, %v3004_v32, inf  ;;  %vm1471_vm1 = vmxor %vm1383_vm14, %vm2256_vm0  ;;  %v1541_v32 = vld [vmem:[#allocation2 + $0x10] sm:$0xff]  ;;  %vm1173_vm15 = vcmp.eq.f32.partialorder %v3058_v2, inf }
 0x231   : > { %1443 = vmax.xlane.f32.xlu0 %v1419_v13  ;;  %2211 = vrsqrt.f32 %v3064_v11  ;;  %vm1487_vm12 = vmand %vm1471_vm1, %vm2638_vm4  ;;  %v1176_v57 = vand.u32 2147483648, %v3058_v2  ;;  %vm1175_vm2 = vcmp.eq.f32.partialorder %v3058_v2, 0.0 }
 0x232   : > { %v1194_v17 = vsub.f32 1.5, %v1193_v33  ;;  %v1503_v51 = vsel %vm1487_vm12, %v3028_v12, inf  ;;  %vm3113_vm14 = vmxor %vm1386_vm6, %vm2256_vm0  ;;  %v1544_v33 = vld [vmem:[#allocation2 + $0x28] sm:$0xff] }
 0x233   : > { %vm1490_vm11 = vmand %vm3113_vm14, %vm2638_vm4 }
 0x234   : > { %1435 = vmax.xlane.f32.xlu1 %v1415_v25  ;;  %v1195_v55 = vmul.f32 %v2208_v9, %v1194_v17  ;;  %v1224_v9 = vand.u32 2147483648, %v3064_v11  ;;  %vm1408_vm9 = vmand %vm1384_vm8, %vm2638_vm4  ;;  %v1546_v17 = vld [vmem:[#allocation2 + $0x38] sm:$0xff] }
 0x235   : > { %vm1410_vm1 = vmand %vm1386_vm6, %vm2638_vm4 }
 0x236   : > { %v2210_v52 = vpop.eup %2209 }
 0x237   : > { %v2212_v23 = vpop.eup %2211  ;;  %v1167_v49 = vmul.f32 %v2210_v52, %v3058_v2 }
 0x238   : > { %v1215_v13 = vmul.f32 %v2212_v23, %v3064_v11 }
 0x239   : > { %1445 = vmax.xlane.f32.xlu0 %v1420_v35  ;;  %v1168_v42 = vmul.f32 %v2210_v52, %v1167_v49 }
 0x23a   : > { %v1216_v19 = vmul.f32 %v2212_v23, %v1215_v13  ;;  %v1540_v13 = vld [vmem:[#allocation2 + $0x8] sm:$0xff] }
 0x23b   : > { %v1169_v38 = vmul.f32 0.5, %v1168_v42  ;;  %v1553_v42 = vld [vmem:[#allocation2 + $0x70] sm:$0xff] }
 0x23c   : > { %1447 = vmax.xlane.f32.xlu1 %v1421_v54  ;;  %v1217_v25 = vmul.f32 0.5, %v1216_v19 }
 0x23d   : > { %v1170_v36 = vsub.f32 1.5, %v1169_v38 }
 0x23e   : > { %v1218_v27 = vsub.f32 1.5, %v1217_v25 }
 0x23f   : > { %v1171_v22 = vmul.f32 %v2210_v52, %v1170_v36 }
 0x241   : > { %v1172_v37 = vmul.f32 %v1171_v22, %v3058_v2 }
 0x244   : > { %1451 = vmax.xlane.f32.xlu1 %v1423_v15 }
 0x24b   : > { %1429 = vmax.xlane.f32.xlu2 %v1412_v40 }
 0x24c   : > { %1455 = vmax.xlane.f32.xlu1 %v1425_v48 }
 0x253   : > { %1521 = vmin.xlane.f32.xlu2 %v1498_v0 }
 0x254   : > { %1507 = vmin.xlane.f32.xlu1 %v2781_v47  ;;  %v1196_v47 = vmul.f32 %v1195_v55, %v1031_v43  ;;  %v1547_v55 = vld [vmem:[#allocation2 + $0x40] sm:$0xff] }
 0x256   : > { %v1198_v62 = vsel %vm1197_vm10, %v1031_v43, %v1196_v47  ;;  %v1174_v43 = vsel %vm1173_vm15, %v3058_v2, %v1172_v37 }
 0x257   : > { %v3081_v20 = vsel %vm1199_vm7, %v1200_v26, %v1198_v62  ;;  %v1177_v24 = vsel %vm1175_vm2, %v1176_v57, %v1174_v43  ;;  %v1594_v43 = vld [vmem:[#allocation3 + $0x30] sm:$0xff]  ;;  %v1597_v57 = vld [vmem:[#allocation3 + $0x48] sm:$0xff] }
 0x258   : > { %v1424_v31 = vsel %vm1408_vm9, %v3081_v20, -inf }
 0x25b   : > { %1527 = vmin.xlane.f32.xlu2 %v1501_v60  ;;  %v1543_v60 = vld [vmem:[#allocation2 + $0x20] sm:$0xff] }
 0x25c   : > { %1511 = vmin.xlane.f32.xlu1 %v2812_v14  ;;  %v1504_v14 = vsel %vm1488_vm3, %v3081_v20, inf  ;;  %vm1221_vm3 = vcmp.eq.f32.partialorder %v3064_v11, inf  ;;  %v1549_v20 = vld [vmem:[#allocation2 + $0x50] sm:$0xff] }
 0x263   : > { %1533 = vmin.xlane.f32.xlu2 %v1504_v14 }
 0x264   : > { %1515 = vmin.xlane.f32.xlu1 %v1495_v45 }
 0x26c   : > { %1519 = vmin.xlane.f32.xlu1 %v2833_v59  ;;  %v1219_v59 = vmul.f32 %v2212_v23, %v1218_v27  ;;  %v1598_v27 = vld [vmem:[#allocation3 + $0x50] sm:$0xff] }
 0x26e   : > { %v1220_v35 = vmul.f32 %v1219_v59, %v3064_v11 }
 0x270   : > { %v1222_v34 = vsel %vm1221_vm3, %v3064_v11, %v1220_v35 }
 0x271   : > { %v1225_v15 = vsel %vm1223_vm13, %v1224_v9, %v1222_v34 }
 0x272   : > { %v1506_v40 = vsel %vm1490_vm11, %v1225_v15, inf  ;;  %v1426_v61 = vsel %vm1410_vm1, %v1225_v15, -inf }
 0x274   : > { %v1428_v5 = vpop.xlane.xlu0 %1427  ;;  %1525 = vmin.xlane.f32.xlu1 %v1500_v28 }
 0x275   : > { %v1555_v39 = vmax.f32 %v1539_v7, %v1428_v5  ;;  %v1590_v5 = vld [vmem:[#allocation3 + $0x10] sm:$0xff] }
 0x277   : > { %1572 = vst.msk [vmem:[#allocation2] sm:$0xff] %vm1571_vm5, %v1555_v39 }
 0x27c   : > { %v3107_v29 = vpop.permute.xlu1 %1347  ;;  %1531 = vmin.xlane.f32.xlu1 %v1503_v51  ;;  %v1432_v53 = vpop.xlane.xlu0 %1431 }
 0x27d   : > { %vm1382_vm10 = vcmp.eq.f32.partialorder %v3107_v29, %v2642_v21  ;;  %v1557_v54 = vmax.f32 %v1541_v32, %v1432_v53  ;;  %v1588_v21 = vld [vmem:[#allocation3] sm:$0xff] }
 0x27e   : > { %vm1406_vm7 = vmand %vm1382_vm10, %vm2638_vm4  ;;  %v1592_v32 = vld [vmem:[#allocation3 + $0x20] sm:$0xff] }
 0x27f   : > { %1574 = vst.msk [vmem:[#allocation2 + $0x10] sm:$0xff] %vm1571_vm5, %v1557_v54  ;;  %v1422_v12 = vsel %vm1406_vm7, %v1177_v24, -inf  ;;  %vm1470_vm8 = vmxor %vm1382_vm10, %vm2256_vm0 }
 0x280   : > { %1449 = vmax.xlane.f32.xlu0 %v1422_v12  ;;  %vm1486_vm12 = vmand %vm1470_vm8, %vm2638_vm4  ;;  %v1600_v12 = vld [vmem:[#allocation3 + $0x60] sm:$0xff] }
 0x281   : > { %v1502_v49 = vsel %vm1486_vm12, %v1177_v24, inf }
 0x284   : > { %1537 = vmin.xlane.f32.xlu1 %v1506_v40  ;;  %v1434_v63 = vpop.xlane.xlu0 %1433 }
 0x285   : > { %v1558_v48 = vmax.f32 %v1542_v58, %v1434_v63  ;;  %v1550_v58 = vld [vmem:[#allocation2 + $0x58] sm:$0xff] }
 0x287   : > { %1575 = vst.msk [vmem:[#allocation2 + $0x18] sm:$0xff] %vm1571_vm5, %v1558_v48  ;;  %v1603_v48 = vld [vmem:[#allocation3 + $0x78] sm:$0xff] }
 0x288   : > { %1453 = vmax.xlane.f32.xlu0 %v1424_v31 }
 0x28c   : > { %v1438_v44 = vpop.xlane.xlu0 %1437 }
 0x28d   : > { %v1560_v3 = vmax.f32 %v1544_v33, %v1438_v44  ;;  %v1552_v44 = vld [vmem:[#allocation2 + $0x68] sm:$0xff] }
 0x28f   : > { %1577 = vst.msk [vmem:[#allocation2 + $0x28] sm:$0xff] %vm1571_vm5, %v1560_v3 }
 0x290   : > { %1457 = vmax.xlane.f32.xlu0 %v1426_v61 }
 0x294   : > { %v1440_v30 = vpop.xlane.xlu0 %1439 }
 0x295   : > { %v1561_v0 = vmax.f32 %v1545_v46, %v1440_v30  ;;  %v1554_v46 = vld [vmem:[#allocation2 + $0x78] sm:$0xff] }
 0x297   : > { %1578 = vst.msk [vmem:[#allocation2 + $0x30] sm:$0xff] %vm1571_vm5, %v1561_v0 }
 0x298   : > { %1509 = vmin.xlane.f32.xlu0 %v2902_v50  ;;  %v1548_v50 = vld [vmem:[#allocation2 + $0x48] sm:$0xff] }
 0x29c   : > { %v1442_v8 = vpop.xlane.xlu0 %1441 }
 0x29d   : > { %v1562_v18 = vmax.f32 %v1546_v17, %v1442_v8  ;;  %v1589_v17 = vld [vmem:[#allocation3 + $0x8] sm:$0xff] }
 0x29f   : > { %1579 = vst.msk [vmem:[#allocation2 + $0x38] sm:$0xff] %vm1571_vm5, %v1562_v18 }
 0x2a0   : > { %1513 = vmin.xlane.f32.xlu0 %v2920_v41 }
 0x2a4   : > { %v1444_v2 = vpop.xlane.xlu0 %1443 }
 0x2a5   : > { %v1563_v11 = vmax.f32 %v1547_v55, %v1444_v2  ;;  %v1591_v55 = vld [vmem:[#allocation3 + $0x18] sm:$0xff] }
 0x2a7   : > { %1580 = vst.msk [vmem:[#allocation2 + $0x40] sm:$0xff] %vm1571_vm5, %v1563_v11  ;;  %v1436_v47 = vpop.xlane.xlu1 %1435 }
 0x2a8   : > { %v1559_v62 = vmax.f32 %v1543_v60, %v1436_v47  ;;  %1517 = vmin.xlane.f32.xlu0 %v2939_v4  ;;  %v1551_v4 = vld [vmem:[#allocation2 + $0x60] sm:$0xff]  ;;  %v1593_v60 = vld [vmem:[#allocation3 + $0x28] sm:$0xff] }
 0x2aa   : > { %1576 = vst.msk [vmem:[#allocation2 + $0x20] sm:$0xff] %vm1571_vm5, %v1559_v62 }
 0x2ac   : > { %v1446_v26 = vpop.xlane.xlu0 %1445 }
 0x2ad   : > { %v1564_v52 = vmax.f32 %v1548_v50, %v1446_v26  ;;  %v1596_v50 = vld [vmem:[#allocation3 + $0x40] sm:$0xff] }
 0x2af   : > { %1581 = vst.msk [vmem:[#allocation2 + $0x48] sm:$0xff] %vm1571_vm5, %v1564_v52  ;;  %v1448_v14 = vpop.xlane.xlu1 %1447 }
 0x2b0   : > { %v1565_v41 = vmax.f32 %v1549_v20, %v1448_v14  ;;  %1523 = vmin.xlane.f32.xlu0 %v2953_v6  ;;  %v1599_v20 = vld [vmem:[#allocation3 + $0x58] sm:$0xff] }
 0x2b2   : > { %1582 = vst.msk [vmem:[#allocation2 + $0x50] sm:$0xff] %vm1571_vm5, %v1565_v41 }
 0x2b7   : > { %v1452_v45 = vpop.xlane.xlu1 %1451 }
 0x2b8   : > { %v1567_v23 = vmax.f32 %v1551_v4, %v1452_v45  ;;  %1529 = vmin.xlane.f32.xlu0 %v1502_v49  ;;  %v1602_v4 = vld [vmem:[#allocation3 + $0x70] sm:$0xff] }
 0x2ba   : > { %1584 = vst.msk [vmem:[#allocation2 + $0x60] sm:$0xff] %vm1571_vm5, %v1567_v23 }
 0x2be   : > { %v1430_v6 = vpop.xlane.xlu2 %1429 }
 0x2bf   : > { %v1556_v19 = vmax.f32 %v1540_v13, %v1430_v6  ;;  %v1456_v1 = vpop.xlane.xlu1 %1455 }
 0x2c0   : > { %v1569_v38 = vmax.f32 %v1553_v42, %v1456_v1  ;;  %1535 = vmin.xlane.f32.xlu0 %v2960_v16  ;;  %v1601_v16 = vld [vmem:[#allocation3 + $0x68] sm:$0xff] }
 0x2c1   : > { %1573 = vst.msk [vmem:[#allocation2 + $0x8] sm:$0xff] %vm1571_vm5, %v1556_v19 }
 0x2c2   : > { %1586 = vst.msk [vmem:[#allocation2 + $0x70] sm:$0xff] %vm1571_vm5, %v1569_v38 }
 0x2c6   : > { %v1522_v25 = vpop.xlane.xlu2 %1521 }
 0x2c7   : > { %v1611_v36 = vmin.f32 %v1595_v10, %v1522_v25  ;;  %v1508_v7 = vpop.xlane.xlu1 %1507 }
 0x2c8   : > { %v1604_v28 = vmin.f32 %v1588_v21, %v1508_v7 }
 0x2c9   : > { %1627 = vst.msk [vmem:[#allocation3 + $0x38] sm:$0xff] %vm1571_vm5, %v1611_v36 }
 0x2ca   : > { %1620 = vst.msk [vmem:[#allocation3] sm:$0xff] %vm1571_vm5, %v1604_v28 }
 0x2ce   : > { %v1528_v22 = vpop.xlane.xlu2 %1527 }
 0x2cf   : > { %v1614_v39 = vmin.f32 %v1598_v27, %v1528_v22  ;;  %v1512_v59 = vpop.xlane.xlu1 %1511 }
 0x2d0   : > { %v1606_v37 = vmin.f32 %v1590_v5, %v1512_v59 }
 0x2d1   : > { %1630 = vst.msk [vmem:[#allocation3 + $0x50] sm:$0xff] %vm1571_vm5, %v1614_v39 }
 0x2d2   : > { %1622 = vst.msk [vmem:[#allocation3 + $0x10] sm:$0xff] %vm1571_vm5, %v1606_v37 }
 0x2d6   : > { %v1534_v51 = vpop.xlane.xlu2 %1533 }
 0x2d7   : > { %v1617_v35 = vmin.f32 %v1601_v16, %v1534_v51  ;;  %v1516_v29 = vpop.xlane.xlu1 %1515 }
 0x2d8   : > { %v1608_v53 = vmin.f32 %v1592_v32, %v1516_v29 }
 0x2d9   : > { %1633 = vst.msk [vmem:[#allocation3 + $0x68] sm:$0xff] %vm1571_vm5, %v1617_v35 }
 0x2da   : > { %1624 = vst.msk [vmem:[#allocation3 + $0x20] sm:$0xff] %vm1571_vm5, %v1608_v53 }
 0x2df   : > { %v1520_v56 = vpop.xlane.xlu1 %1519 }
 0x2e0   : > { %v1610_v54 = vmin.f32 %v1594_v43, %v1520_v56 }
 0x2e2   : > { %1626 = vst.msk [vmem:[#allocation3 + $0x30] sm:$0xff] %vm1571_vm5, %v1610_v54 }
 0x2e7   : > { %v1526_v24 = vpop.xlane.xlu1 %1525 }
 0x2e8   : > { %v1613_v34 = vmin.f32 %v1597_v57, %v1526_v24 }
 0x2ea   : > { %1629 = vst.msk [vmem:[#allocation3 + $0x48] sm:$0xff] %vm1571_vm5, %v1613_v34 }
 0x2ef   : > { %v1532_v9 = vpop.xlane.xlu1 %1531 }
 0x2f0   : > { %v1616_v15 = vmin.f32 %v1600_v12, %v1532_v9 }
 0x2f2   : > { %1632 = vst.msk [vmem:[#allocation3 + $0x60] sm:$0xff] %vm1571_vm5, %v1616_v15 }
 0x2f3   : > { %v1450_v40 = vpop.xlane.xlu0 %1449 }
 0x2f4   : > { %v1566_v63 = vmax.f32 %v1550_v58, %v1450_v40 }
 0x2f6   : > { %1583 = vst.msk [vmem:[#allocation2 + $0x58] sm:$0xff] %vm1571_vm5, %v1566_v63 }
 0x2f7   : > { %v1538_v31 = vpop.xlane.xlu1 %1537 }
 0x2f8   : > { %v1619_v33 = vmin.f32 %v1603_v48, %v1538_v31 }
 0x2fa   : > { %1635 = vst.msk [vmem:[#allocation3 + $0x78] sm:$0xff] %vm1571_vm5, %v1619_v33 }
 0x2fb   : > { %v1454_v3 = vpop.xlane.xlu0 %1453 }
 0x2fc   : > { %v1568_v61 = vmax.f32 %v1552_v44, %v1454_v3 }
 0x2fe   : > { %1585 = vst.msk [vmem:[#allocation2 + $0x68] sm:$0xff] %vm1571_vm5, %v1568_v61 }
 0x303   : > { %v1458_v30 = vpop.xlane.xlu0 %1457 }
 0x304   : > { %v1570_v0 = vmax.f32 %v1554_v46, %v1458_v30 }
 0x306   : > { %1587 = vst.msk [vmem:[#allocation2 + $0x78] sm:$0xff] %vm1571_vm5, %v1570_v0 }
 0x30b   : > { %v1510_v8 = vpop.xlane.xlu0 %1509 }
 0x30c   : > { %v1605_v18 = vmin.f32 %v1589_v17, %v1510_v8 }
 0x30e   : > { %1621 = vst.msk [vmem:[#allocation3 + $0x8] sm:$0xff] %vm1571_vm5, %v1605_v18 }
 0x313   : > { %v1514_v2 = vpop.xlane.xlu0 %1513 }
 0x314   : > { %v1607_v11 = vmin.f32 %v1591_v55, %v1514_v2 }
 0x316   : > { %1623 = vst.msk [vmem:[#allocation3 + $0x18] sm:$0xff] %vm1571_vm5, %v1607_v11 }
 0x31b   : > { %v1518_v47 = vpop.xlane.xlu0 %1517 }
 0x31c   : > { %v1609_v62 = vmin.f32 %v1593_v60, %v1518_v47 }
 0x31e   : > { %1625 = vst.msk [vmem:[#allocation3 + $0x28] sm:$0xff] %vm1571_vm5, %v1609_v62 }
 0x323   : > { %v1524_v26 = vpop.xlane.xlu0 %1523 }
 0x324   : > { %v1612_v52 = vmin.f32 %v1596_v50, %v1524_v26 }
 0x326   : > { %1628 = vst.msk [vmem:[#allocation3 + $0x40] sm:$0xff] %vm1571_vm5, %v1612_v52 }
 0x32b   : > { %v1530_v14 = vpop.xlane.xlu0 %1529 }
 0x32c   : > { %v1615_v41 = vmin.f32 %v1599_v20, %v1530_v14 }
 0x32e   : > { %1631 = vst.msk [vmem:[#allocation3 + $0x58] sm:$0xff] %vm1571_vm5, %v1615_v41 }
 0x332   : > { %1639 = sbr.rel (%p2052_p9) target bundleno = 991 (0x3df), region = 52 }
 0x333   : > { %v1536_v45 = vpop.xlane.xlu0 %1535 }
 0x334   : > { %v1618_v23 = vmin.f32 %v1602_v4, %v1536_v45 }
 0x336   : > { %1634 = vst.msk [vmem:[#allocation3 + $0x70] sm:$0xff] %vm1571_vm5, %v1618_v23 }
 0x337   : > { %v1656_v49 = vld [vmem:[#allocation3] sm:$0xff]  ;;  %v1657_v6 = vld [vmem:[#allocation3 + $0x8] sm:$0xff]  ;;  %v3187_v1 = vstv %s1688_s26  ;;  %v1658_v36 = vld [vmem:[#allocation3 + $0x10] sm:$0xff] }
 0x338   : > { %v1640_v13 = vld [vmem:[#allocation2] sm:$0xff]  ;;  %1755 = vxpose.xlu1.b32.start [1/16] (narrow) %v1656_v49, 8  ;;  %v1641_v19 = vld [vmem:[#allocation2 + $0x8] sm:$0xff]  ;;  %v1642_v7 = vld [vmem:[#allocation2 + $0x10] sm:$0xff] }
 0x339   : > { %1722 = vxpose.xlu0.b32.start [1/16] (narrow) %v1640_v13, 8  ;;  %v1672_v42 = vsub.f32 %v1640_v13, %v1656_v49  ;;  %v1673_v38 = vsub.f32 %v1641_v19, %v1657_v6  ;;  %v1674_v28 = vsub.f32 %v1642_v7, %v1658_v36  ;;  %v1659_v22 = vld [vmem:[#allocation3 + $0x18] sm:$0xff]  ;;  %v1660_v32 = vld [vmem:[#allocation3 + $0x20] sm:$0xff]  ;;  %v1661_v43 = vld [vmem:[#allocation3 + $0x28] sm:$0xff] }
 0x33a   : > { %v1643_v39 = vld [vmem:[#allocation2 + $0x18] sm:$0xff]  ;;  %v1644_v51 = vld [vmem:[#allocation2 + $0x20] sm:$0xff]  ;;  %v1645_v56 = vld [vmem:[#allocation2 + $0x28] sm:$0xff] }
 0x33b   : > { %v1690_v10 = vadd.f32 %v3187_v1, %v1672_v42  ;;  %v1691_v25 = vadd.f32 %v3187_v1, %v1673_v38  ;;  %v1692_v5 = vadd.f32 %v3187_v1, %v1674_v28  ;;  %v1675_v59 = vsub.f32 %v1643_v39, %v1659_v22  ;;  %v1662_v34 = vld [vmem:[#allocation3 + $0x30] sm:$0xff]  ;;  %v1663_v40 = vld [vmem:[#allocation3 + $0x38] sm:$0xff]  ;;  %v1664_v44 = vld [vmem:[#allocation3 + $0x40] sm:$0xff] }
 0x33c   : > { %v1676_v35 = vsub.f32 %v1644_v51, %v1660_v32  ;;  %v1677_v54 = vsub.f32 %v1645_v56, %v1661_v43  ;;  %v1646_v12 = vld [vmem:[#allocation2 + $0x30] sm:$0xff]  ;;  %v1647_v63 = vld [vmem:[#allocation2 + $0x38] sm:$0xff]  ;;  %v1648_v3 = vld [vmem:[#allocation2 + $0x40] sm:$0xff] }
 0x33d   : > { %v1706_v21 = vmax.f32 %v1690_v10, 0.0  ;;  %v1707_v27 = vmax.f32 %v1691_v25, 0.0  ;;  %v1708_v37 = vmax.f32 %v1692_v5, 0.0  ;;  %v1693_v16 = vadd.f32 %v3187_v1, %v1675_v59  ;;  %v1665_v0 = vld [vmem:[#allocation3 + $0x48] sm:$0xff]  ;;  %v1666_v2 = vld [vmem:[#allocation3 + $0x50] sm:$0xff]  ;;  %v1667_v50 = vld [vmem:[#allocation3 + $0x58] sm:$0xff] }
 0x33e   : > { %v1694_v53 = vadd.f32 %v3187_v1, %v1676_v35  ;;  %v1695_v24 = vadd.f32 %v3187_v1, %v1677_v54  ;;  %v1678_v9 = vsub.f32 %v1646_v12, %v1662_v34  ;;  %v1679_v48 = vsub.f32 %v1647_v63, %v1663_v40  ;;  %v1649_v17 = vld [vmem:[#allocation2 + $0x48] sm:$0xff]  ;;  %v1650_v11 = vld [vmem:[#allocation2 + $0x50] sm:$0xff]  ;;  %v1651_v26 = vld [vmem:[#allocation2 + $0x58] sm:$0xff] }
 0x33f   : > { %1788 = vxpose.xlu2.b32.start [1/16] (narrow) %v1706_v21, 8  ;;  %v1709_v29 = vmax.f32 %v1693_v16, 0.0  ;;  %v1680_v61 = vsub.f32 %v1648_v3, %v1664_v44  ;;  %v1681_v8 = vsub.f32 %v1649_v17, %v1665_v0  ;;  %v1682_v60 = vsub.f32 %v1650_v11, %v1666_v2  ;;  %v1668_v41 = vld [vmem:[#allocation3 + $0x60] sm:$0xff]  ;;  %v1669_v13 = vld [vmem:[#allocation3 + $0x68] sm:$0xff]  ;;  %v1670_v10 = vld [vmem:[#allocation3 + $0x70] sm:$0xff] }
 0x340   : > { %1756 = vxpose.xlu1.b32.cont [2/16] (narrow) %v1657_v6, 8  ;;  %v1710_v57 = vmax.f32 %v1694_v53, 0.0  ;;  %v1711_v15 = vmax.f32 %v1695_v24, 0.0  ;;  %v1696_v58 = vadd.f32 %v3187_v1, %v1678_v9  ;;  %v1697_v33 = vadd.f32 %v3187_v1, %v1679_v48  ;;  %v1652_v4 = vld [vmem:[#allocation2 + $0x60] sm:$0xff]  ;;  %v1653_v42 = vld [vmem:[#allocation2 + $0x68] sm:$0xff]  ;;  %v1654_v21 = vld [vmem:[#allocation2 + $0x70] sm:$0xff] }
 0x341   : > { %1723 = vxpose.xlu0.b32.cont [2/16] (narrow) %v1641_v19, 8  ;;  %v1698_v30 = vadd.f32 %v3187_v1, %v1680_v61  ;;  %v1699_v55 = vadd.f32 %v3187_v1, %v1681_v8  ;;  %v1700_v62 = vadd.f32 %v3187_v1, %v1682_v60  ;;  %v1683_v52 = vsub.f32 %v1651_v26, %v1667_v50  ;;  %v1671_v28 = vld [vmem:[#allocation3 + $0x78] sm:$0xff] }
 0x342   : > { %v1712_v31 = vmax.f32 %v1696_v58, 0.0  ;;  %v1713_v46 = vmax.f32 %v1697_v33, 0.0  ;;  %v1684_v45 = vsub.f32 %v1652_v4, %v1668_v41  ;;  %v1685_v6 = vsub.f32 %v1653_v42, %v1669_v13 }
 0x343   : > { %v1714_v18 = vmax.f32 %v1698_v30, 0.0  ;;  %v1715_v47 = vmax.f32 %v1699_v55, 0.0  ;;  %v1716_v20 = vmax.f32 %v1700_v62, 0.0  ;;  %v1701_v14 = vadd.f32 %v3187_v1, %v1683_v52 }
 0x344   : > { %v1702_v49 = vadd.f32 %v3187_v1, %v1684_v45  ;;  %v1703_v38 = vadd.f32 %v3187_v1, %v1685_v6  ;;  %v1686_v25 = vsub.f32 %v1654_v21, %v1670_v10 }
 0x345   : > { %v1717_v23 = vmax.f32 %v1701_v14, 0.0 }
 0x346   : > { %v1718_v19 = vmax.f32 %v1702_v49, 0.0 }
 0x347   : > { %1789 = vxpose.xlu2.b32.cont [2/16] (narrow) %v1707_v27, 8  ;;  %v1655_v27 = vld [vmem:[#allocation2 + $0x78] sm:$0xff] }
 0x348   : > { %1757 = vxpose.xlu1.b32.cont [3/16] (narrow) %v1658_v36, 8  ;;  %v1719_v36 = vmax.f32 %v1703_v38, 0.0  ;;  %v1687_v5 = vsub.f32 %v1655_v27, %v1671_v28 }
 0x349   : > { %1724 = vxpose.xlu0.b32.cont [3/16] (narrow) %v1642_v7, 8  ;;  %v1704_v7 = vadd.f32 %v3187_v1, %v1686_v25 }
 0x34f   : > { %1790 = vxpose.xlu2.b32.cont [3/16] (narrow) %v1708_v37, 8 }
 0x350   : > { %1758 = vxpose.xlu1.b32.cont [4/16] (narrow) %v1659_v22, 8  ;;  %v1720_v22 = vmax.f32 %v1704_v7, 0.0 }
 0x351   : > { %1725 = vxpose.xlu0.b32.cont [4/16] (narrow) %v1643_v39, 8  ;;  %v1705_v39 = vadd.f32 %v3187_v1, %v1687_v5 }
 0x353   : > { %v1721_v59 = vmax.f32 %v1705_v39, 0.0 }
 0x357   : > { %1791 = vxpose.xlu2.b32.cont [4/16] (narrow) %v1709_v29, 8 }
 0x358   : > { %1759 = vxpose.xlu1.b32.cont [5/16] (narrow) %v1660_v32, 8 }
 0x359   : > { %1726 = vxpose.xlu0.b32.cont [5/16] (narrow) %v1644_v51, 8 }
 0x35f   : > { %1792 = vxpose.xlu2.b32.cont [5/16] (narrow) %v1710_v57, 8 }
 0x360   : > { %1760 = vxpose.xlu1.b32.cont [6/16] (narrow) %v1661_v43, 8 }
 0x361   : > { %1727 = vxpose.xlu0.b32.cont [6/16] (narrow) %v1645_v56, 8 }
 0x367   : > { %1793 = vxpose.xlu2.b32.cont [6/16] (narrow) %v1711_v15, 8 }
 0x368   : > { %1761 = vxpose.xlu1.b32.cont [7/16] (narrow) %v1662_v34, 8 }
 0x369   : > { %1728 = vxpose.xlu0.b32.cont [7/16] (narrow) %v1646_v12, 8 }
 0x36f   : > { %1794 = vxpose.xlu2.b32.cont [7/16] (narrow) %v1712_v31, 8 }
 0x370   : > { %1762 = vxpose.xlu1.b32.cont [8/16] (narrow) %v1663_v40, 8 }
 0x371   : > { %1729 = vxpose.xlu0.b32.cont [8/16] (narrow) %v1647_v63, 8 }
 0x377   : > { %1795 = vxpose.xlu2.b32.cont [8/16] (narrow) %v1713_v46, 8 }
 0x378   : > { %1763 = vxpose.xlu1.b32.cont [9/16] (narrow) %v1664_v44, 8 }
 0x379   : > { %1730 = vxpose.xlu0.b32.cont [9/16] (narrow) %v1648_v3, 8 }
 0x37f   : > { %1796 = vxpose.xlu2.b32.cont [9/16] (narrow) %v1714_v18, 8 }
 0x380   : > { %1764 = vxpose.xlu1.b32.cont [10/16] (narrow) %v1665_v0, 8 }
 0x381   : > { %1731 = vxpose.xlu0.b32.cont [10/16] (narrow) %v1649_v17, 8 }
 0x387   : > { %1797 = vxpose.xlu2.b32.cont [10/16] (narrow) %v1715_v47, 8 }
 0x388   : > { %1765 = vxpose.xlu1.b32.cont [11/16] (narrow) %v1666_v2, 8 }
 0x389   : > { %1732 = vxpose.xlu0.b32.cont [11/16] (narrow) %v1650_v11, 8 }
 0x38f   : > { %1798 = vxpose.xlu2.b32.cont [11/16] (narrow) %v1716_v20, 8 }
 0x390   : > { %1766 = vxpose.xlu1.b32.cont [12/16] (narrow) %v1667_v50, 8 }
 0x391   : > { %1733 = vxpose.xlu0.b32.cont [12/16] (narrow) %v1651_v26, 8 }
 0x397   : > { %1799 = vxpose.xlu2.b32.cont [12/16] (narrow) %v1717_v23, 8 }
 0x398   : > { %1767 = vxpose.xlu1.b32.cont [13/16] (narrow) %v1668_v41, 8 }
 0x399   : > { %1734 = vxpose.xlu0.b32.cont [13/16] (narrow) %v1652_v4, 8 }
 0x39f   : > { %1800 = vxpose.xlu2.b32.cont [13/16] (narrow) %v1718_v19, 8 }
 0x3a0   : > { %1768 = vxpose.xlu1.b32.cont [14/16] (narrow) %v1669_v13, 8 }
 0x3a1   : > { %1735 = vxpose.xlu0.b32.cont [14/16] (narrow) %v1653_v42, 8 }
 0x3a7   : > { %1801 = vxpose.xlu2.b32.cont [14/16] (narrow) %v1719_v36, 8 }
 0x3a8   : > { %1769 = vxpose.xlu1.b32.cont [15/16] (narrow) %v1670_v10, 8 }
 0x3a9   : > { %1736 = vxpose.xlu0.b32.cont [15/16] (narrow) %v1654_v21, 8 }
 0x3af   : > { %1802 = vxpose.xlu2.b32.cont [15/16] (narrow) %v1720_v22, 8 }
 0x3b0   : > { %1770 = vxpose.xlu1.b32.end [16/16] (narrow) %v1671_v28, 8 }
 0x3b1   : > { %1737 = vxpose.xlu0.b32.end [16/16] (narrow) %v1655_v27, 8 }
 0x3b7   : > { %1803 = vxpose.xlu2.b32.end [16/16] (narrow) %v1721_v59, 8 }
 0x3d8   : > { %v1804_v37 = vpop.trf.xlu2 }
 0x3d9   : > { %1820 = vst [vmem:[%s400_s25] sm:$0x1] %v1804_v37 }
 0x3dc   : > { %v1771_v16 = vpop.trf.xlu1 }
 0x3dd   : > { %v1738_v32 = vpop.trf.xlu0  ;;  %1787 = vst [vmem:[%s397_s17] sm:$0x1] %v1771_v16 }
 0x3de   : > { %1754 = vst [vmem:[%s394_s19] sm:$0x1] %v1738_v32 }
 0x3df PF: > { %s21_s13 = sadd.s32 1, %s2251_s13   ;;  %s3262_s9 = smov %s2243_s11 }
 0x3e0   : > { %p18_p10 = scmp.ge.s32.totalorder %s21_s13, 6   ;;  %s3263_s10 = smov %s2247_s12 }
 0x3e1   : > { %s3264_s11 = smov %s3267_s0  ;;  %s3265_s12 = smov %s3271_s1 }
 0x3e2   :  { %20 = sbr.rel (!%p18_p10) target bundleno = 4 (0x4), region = 115 }

</bundles_post_ra>
